<compile_context>
chip_gen: v7x
topology: tpu7x:2x2x1
jax: 0.10.0
libtpu: 0.0.40
codegen_flags: <defaults>
</compile_context>

<pallas_src>
import math

import jax
import jax.numpy as jnp
from jax.experimental import pallas as pl
from jax.experimental.pallas import tpu as pltpu

# ---- model / problem sizes (conf) -------------------------------------------
D_INPUT = 16      # conf['d_input']
D_MODEL = 32      # conf['d_model']
N_HEAD = 4        # conf['n_head']
D_INNER = 64      # conf['d_inner']
N_LAYERS = 2      # conf['n_layers']
HEAD_DIM = D_MODEL // N_HEAD
LN_EPS = 1e-5

BATCH = 2
SEQ = 8
NEG_INF = -1e30


# ---- shared math (used inside the kernel and in the pure-JAX reference) -----
def _erf(x):
    # Abramowitz & Stegun 7.1.26 polynomial (|error| < 1.5e-7): matches
    # PyTorch's exact-erf GELU well within f32/test precision.
    a1, a2, a3, a4, a5 = 0.254829592, -0.284496736, 1.421413741, -1.453152027, 1.061405429
    pc = 0.3275911
    ax = jnp.abs(x)
    t = 1.0 / (1.0 + pc * ax)
    poly = ((((a5 * t + a4) * t + a3) * t + a2) * t + a1) * t
    y = 1.0 - poly * jnp.exp(-ax * ax)
    return jnp.where(x >= 0, y, -y)


def _gelu(x):
    # exact GELU (PyTorch activation='gelu')
    return 0.5 * x * (1.0 + _erf(x * 0.7071067811865476))


def _layernorm(x, g, b):
    mu = jnp.mean(x, axis=-1, keepdims=True)
    var = jnp.mean((x - mu) ** 2, axis=-1, keepdims=True)
    return (x - mu) * jax.lax.rsqrt(var + LN_EPS) * g + b


# ---- Pallas kernel -----------------------------------------------------------
def speech_kernel(x_ref, inb_ref, addm_ref, headm_ref, segm_ref,
                  win_ref,
                  qw_ref, qb_ref, kw_ref, kb_ref, vw_ref, vb_ref,
                  ow_ref, ob_ref,
                  ln1g_ref, ln1b_ref, ln2g_ref, ln2b_ref,
                  f1w_ref, f1b_ref, f2w_ref, f2b_ref,
                  lnog_ref, lnob_ref, wout_ref, bout_ref,
                  out_ref):
    f32 = jnp.float32
    x = x_ref[...]                  # (B*S, d_input)
    add_mask = addm_ref[...]        # (B*S, H*B*S): 0 valid / -1e30 (padded key or other batch)
    head_mask = headm_ref[...]      # (H*B*S, D_MODEL): 1 where lane belongs to the row's head
    seg_mask = segm_ref[...]        # (H*B*S, H*B*S): 1 within the same (head, batch) segment

    # input projection (+ positional encoding folded into the per-row bias)
    h = jnp.dot(x, win_ref[...], preferred_element_type=f32) + inb_ref[...]

    scale = 1.0 / math.sqrt(HEAD_DIM)
    for l in range(N_LAYERS):
        # ---- multi-head self-attention: all batches & heads in 3 MXU calls ----
        q = jnp.dot(h, qw_ref[l], preferred_element_type=f32) + qb_ref[l]
        k = jnp.dot(h, kw_ref[l], preferred_element_type=f32) + kb_ref[l]
        v = jnp.dot(h, vw_ref[l], preferred_element_type=f32) + vb_ref[l]

        # Stack heads along sublanes (row order = (head, batch, key)); zero the
        # lanes of other heads so one big matmul yields per-head scores.
        k_st = jnp.concatenate([k] * N_HEAD, axis=0) * head_mask     # (H*B*S, D_MODEL)
        v_st = jnp.concatenate([v] * N_HEAD, axis=0) * head_mask     # (H*B*S, D_MODEL)

        s = jax.lax.dot_general(q * scale, k_st, (((1,), (1,)), ((), ())),
                                preferred_element_type=f32)          # (B*S, H*B*S)
        s = s + add_mask
        s = s - jnp.max(s, axis=-1, keepdims=True)                   # row max >= segment max
        e = jnp.exp(s)                                               # masked entries -> 0
        # per-(head,batch) softmax denominator broadcast to its 8 lanes via one block matmul
        denom = jnp.dot(e, seg_mask, preferred_element_type=f32)
        p = e * pl.reciprocal(jnp.maximum(denom, 1e-30), approx=True)
        attn = jnp.dot(p, v_st, preferred_element_type=f32)          # (B*S, D_MODEL), heads concat

        attn = jnp.dot(attn, ow_ref[l], preferred_element_type=f32) + ob_ref[l]
        h = _layernorm(h + attn, ln1g_ref[l], ln1b_ref[l])

        # ---- feed-forward ----
        f = jnp.dot(h, f1w_ref[l], preferred_element_type=f32) + f1b_ref[l]
        f = _gelu(f)
        f = jnp.dot(f, f2w_ref[l], preferred_element_type=f32) + f2b_ref[l]
        h = _layernorm(h + f, ln2g_ref[l], ln2b_ref[l])

    # ---- output head: LayerNorm + Linear ----
    h = _layernorm(h, lnog_ref[...], lnob_ref[...])
    out_ref[...] = jnp.dot(h, wout_ref[...], preferred_element_type=f32) + bout_ref[...]


# ---- wrapper -----------------------------------------------------------------
def _spec(shape):
    nd = len(shape)
    return pl.BlockSpec(tuple(shape), lambda i, _nd=nd: (0,) * _nd)


@jax.jit
def speech_model_forward(x, mask, params):
    B, S, _ = x.shape
    BS = B * S
    NC = N_HEAD * BS                     # stacked attention columns (head, batch, key)

    x2d = x.reshape(BS, D_INPUT).astype(jnp.float32)

    # positional encoding folded into the input-projection bias (per flattened row)
    in_bias = (jnp.tile(params["pos"][:S], (B, 1)) + params["b_in"]).astype(jnp.float32)

    cols = jnp.arange(NC)
    col_b = (cols % BS) // S             # batch that owns key column c
    col_t = cols % S                     # key position within that batch
    row_b = jnp.arange(BS) // S          # batch of each query row
    valid = mask[col_b, col_t][None, :] & (row_b[:, None] == col_b[None, :])
    add_mask = jnp.where(valid, 0.0, NEG_INF).astype(jnp.float32)              # (BS, NC)

    head_of_row = cols // BS
    head_of_lane = jnp.arange(D_MODEL) // HEAD_DIM
    head_mask = (head_of_row[:, None] == head_of_lane[None, :]).astype(jnp.float32)  # (NC, D_MODEL)

    seg = cols // S
    seg_mask = (seg[:, None] == seg[None, :]).astype(jnp.float32)              # (NC, NC)

    inputs = (x2d, in_bias, add_mask, head_mask, seg_mask,
              params["w_in"],
              params["q_w"], params["q_b"], params["k_w"], params["k_b"],
              params["v_w"], params["v_b"],
              params["out_w"], params["out_b"],
              params["ln1_g"], params["ln1_b"], params["ln2_g"], params["ln2_b"],
              params["ff1_w"], params["ff1_b"], params["ff2_w"], params["ff2_b"],
              params["lno_g"], params["lno_b"], params["w_out"], params["b_out"])

    out2d = pl.pallas_call(
        speech_kernel,
        out_shape=jax.ShapeDtypeStruct((BS, D_MODEL), jnp.float32),
        grid_spec=pltpu.PrefetchScalarGridSpec(
            num_scalar_prefetch=0,
            grid=(1,),                                      # batch fused into one step
            in_specs=[_spec(a.shape) for a in inputs],
            out_specs=_spec((BS, D_MODEL)),
        ),
        compiler_params=pltpu.CompilerParams(
            dimension_semantics=("arbitrary",)),
    )(*inputs)
    return out2d.reshape(B, S, D_MODEL), mask


# ---- deterministic parameter init (synthetic; no checkpoint load) ------------
def init_params(key):
    keys = iter(jax.random.split(key, 20))

    def nrm(shape, scale):
        return (scale * jax.random.normal(next(keys), shape)).astype(jnp.float32)

    L = N_LAYERS
    sd = 1.0 / math.sqrt(D_MODEL)
    p = {}
    p["w_in"] = nrm((D_INPUT, D_MODEL), 1.0 / math.sqrt(D_INPUT))
    p["b_in"] = nrm((1, D_MODEL), 0.02)

    # sinusoidal positional encoding (first SEQ rows of the max_len=5000 table)
    pos = jnp.arange(SEQ, dtype=jnp.float32)[:, None]
    two_i = jnp.arange(0, D_MODEL, 2, dtype=jnp.float32)
    angle = pos / jnp.power(10000.0, two_i / D_MODEL)
    pe = jnp.zeros((SEQ, D_MODEL), jnp.float32)
    pe = pe.at[:, 0::2].set(jnp.sin(angle))
    pe = pe.at[:, 1::2].set(jnp.cos(angle))
    p["pos"] = pe

    # transformer layer weights, stacked along layer dim, stored [in, out];
    # QKV in-projection pre-split into q/k/v so the kernel never slices values.
    p["q_w"] = nrm((L, D_MODEL, D_MODEL), sd)
    p["q_b"] = nrm((L, 1, D_MODEL), 0.02)
    p["k_w"] = nrm((L, D_MODEL, D_MODEL), sd)
    p["k_b"] = nrm((L, 1, D_MODEL), 0.02)
    p["v_w"] = nrm((L, D_MODEL, D_MODEL), sd)
    p["v_b"] = nrm((L, 1, D_MODEL), 0.02)
    p["out_w"] = nrm((L, D_MODEL, D_MODEL), sd)
    p["out_b"] = nrm((L, 1, D_MODEL), 0.02)
    p["ln1_g"] = jnp.ones((L, 1, D_MODEL), jnp.float32)
    p["ln1_b"] = jnp.zeros((L, 1, D_MODEL), jnp.float32)
    p["ln2_g"] = jnp.ones((L, 1, D_MODEL), jnp.float32)
    p["ln2_b"] = jnp.zeros((L, 1, D_MODEL), jnp.float32)
    p["ff1_w"] = nrm((L, D_MODEL, D_INNER), sd)
    p["ff1_b"] = nrm((L, 1, D_INNER), 0.02)
    p["ff2_w"] = nrm((L, D_INNER, D_MODEL), 1.0 / math.sqrt(D_INNER))
    p["ff2_b"] = nrm((L, 1, D_MODEL), 0.02)
    p["lno_g"] = jnp.ones((1, D_MODEL), jnp.float32)
    p["lno_b"] = jnp.zeros((1, D_MODEL), jnp.float32)
    p["w_out"] = nrm((D_MODEL, D_MODEL), sd)
    p["b_out"] = nrm((1, D_MODEL), 0.02)
    return p


# ---- pure-JAX reference (same math, standard per-batch/per-head attention) ---
def reference_forward(x, mask, p):
    B, S, _ = x.shape
    h = x @ p["w_in"] + p["b_in"]
    h = h + p["pos"][None, :S]
    bias = jnp.where(mask, 0.0, NEG_INF)[:, None, None, :]   # (B,1,1,S)
    scale = 1.0 / math.sqrt(HEAD_DIM)
    for l in range(N_LAYERS):
        q = h @ p["q_w"][l] + p["q_b"][l]
        k = h @ p["k_w"][l] + p["k_b"][l]
        v = h @ p["v_w"][l] + p["v_b"][l]

        def heads(t):
            return t.reshape(B, S, N_HEAD, HEAD_DIM).transpose(0, 2, 1, 3)

        qh, kh, vh = heads(q), heads(k), heads(v)
        s = jnp.einsum("bhqd,bhkd->bhqk", qh * scale, kh) + bias
        pattn = jax.nn.softmax(s, axis=-1)
        o = jnp.einsum("bhqk,bhkd->bhqd", pattn, vh)
        o = o.transpose(0, 2, 1, 3).reshape(B, S, D_MODEL)
        o = o @ p["out_w"][l] + p["out_b"][l]
        h = _layernorm(h + o, p["ln1_g"][l], p["ln1_b"][l])
        f = h @ p["ff1_w"][l] + p["ff1_b"][l]
        f = _gelu(f)
        f = f @ p["ff2_w"][l] + p["ff2_b"][l]
        h = _layernorm(h + f, p["ln2_g"][l], p["ln2_b"][l])
    h = _layernorm(h, p["lno_g"], p["lno_b"])
    return h @ p["w_out"] + p["b_out"]


if __name__ == "__main__":
    key = jax.random.PRNGKey(0)
    pkey, xkey = jax.random.split(key)
    params = init_params(pkey)

    x = jax.random.normal(xkey, (BATCH, SEQ, D_INPUT), jnp.float32)
    mask = jnp.array([[True] * SEQ,
                      [True] * (SEQ - 2) + [False] * 2])   # second seq has 2 pad frames

    out, out_mask = speech_model_forward(x, mask, params)
    out = jax.block_until_ready(out)

    assert out.shape == (BATCH, SEQ, D_MODEL)
    assert out_mask.shape == (BATCH, SEQ)
    assert bool(jnp.all(jnp.isfinite(out)))

    # reference computed at full f32 matmul precision (kernel uses default/single-pass)
    with jax.default_matmul_precision("float32"):
        ref = reference_forward(x, mask, params)
    max_err = float(jnp.max(jnp.abs(out - ref)))
    assert jnp.allclose(out, ref, rtol=5e-2, atol=5e-2), f"max abs err {max_err}"

    print("KERNEL_OK")
</pallas_src>

<mosaic_0001>
module attributes {stable_mosaic.version = 11 : i64} {
  func.func @speech_kernel(%arg0: i32, %arg1: memref<16x16xf32, #tpu.memory_space<vmem>>, %arg2: memref<16x32xf32, #tpu.memory_space<vmem>>, %arg3: memref<16x64xf32, #tpu.memory_space<vmem>>, %arg4: memref<64x32xf32, #tpu.memory_space<vmem>>, %arg5: memref<64x64xf32, #tpu.memory_space<vmem>>, %arg6: memref<16x32xf32, #tpu.memory_space<vmem>>, %arg7: memref<2x32x32xf32, #tpu.memory_space<vmem>>, %arg8: memref<2x1x32xf32, #tpu.memory_space<vmem>>, %arg9: memref<2x32x32xf32, #tpu.memory_space<vmem>>, %arg10: memref<2x1x32xf32, #tpu.memory_space<vmem>>, %arg11: memref<2x32x32xf32, #tpu.memory_space<vmem>>, %arg12: memref<2x1x32xf32, #tpu.memory_space<vmem>>, %arg13: memref<2x32x32xf32, #tpu.memory_space<vmem>>, %arg14: memref<2x1x32xf32, #tpu.memory_space<vmem>>, %arg15: memref<2x1x32xf32, #tpu.memory_space<vmem>>, %arg16: memref<2x1x32xf32, #tpu.memory_space<vmem>>, %arg17: memref<2x1x32xf32, #tpu.memory_space<vmem>>, %arg18: memref<2x1x32xf32, #tpu.memory_space<vmem>>, %arg19: memref<2x32x64xf32, #tpu.memory_space<vmem>>, %arg20: memref<2x1x64xf32, #tpu.memory_space<vmem>>, %arg21: memref<2x64x32xf32, #tpu.memory_space<vmem>>, %arg22: memref<2x1x32xf32, #tpu.memory_space<vmem>>, %arg23: memref<1x32xf32, #tpu.memory_space<vmem>>, %arg24: memref<1x32xf32, #tpu.memory_space<vmem>>, %arg25: memref<32x32xf32, #tpu.memory_space<vmem>>, %arg26: memref<1x32xf32, #tpu.memory_space<vmem>>, %arg27: memref<16x32xf32, #tpu.memory_space<vmem>>) attributes {dimension_semantics = [#tpu.dimension_semantics<arbitrary>], iteration_bounds = array<i64: 1>, scalar_prefetch = 0 : i64, scratch_operands = 0 : i64, tpu.core_type = #tpu.core_type<tc>, window_params = [{pipeline_mode = #tpu.pipeline_mode<synchronous>, transform_indices = @transform_0, window_bounds = array<i64: 16, 16>}, {pipeline_mode = #tpu.pipeline_mode<synchronous>, transform_indices = @transform_1, window_bounds = array<i64: 16, 32>}, {pipeline_mode = #tpu.pipeline_mode<synchronous>, transform_indices = @transform_2, window_bounds = array<i64: 16, 64>}, {pipeline_mode = #tpu.pipeline_mode<synchronous>, transform_indices = @transform_3, window_bounds = array<i64: 64, 32>}, {pipeline_mode = #tpu.pipeline_mode<synchronous>, transform_indices = @transform_4, window_bounds = array<i64: 64, 64>}, {pipeline_mode = #tpu.pipeline_mode<synchronous>, transform_indices = @transform_5, window_bounds = array<i64: 16, 32>}, {pipeline_mode = #tpu.pipeline_mode<synchronous>, transform_indices = @transform_6, window_bounds = array<i64: 2, 32, 32>}, {pipeline_mode = #tpu.pipeline_mode<synchronous>, transform_indices = @transform_7, window_bounds = array<i64: 2, 1, 32>}, {pipeline_mode = #tpu.pipeline_mode<synchronous>, transform_indices = @transform_8, window_bounds = array<i64: 2, 32, 32>}, {pipeline_mode = #tpu.pipeline_mode<synchronous>, transform_indices = @transform_9, window_bounds = array<i64: 2, 1, 32>}, {pipeline_mode = #tpu.pipeline_mode<synchronous>, transform_indices = @transform_10, window_bounds = array<i64: 2, 32, 32>}, {pipeline_mode = #tpu.pipeline_mode<synchronous>, transform_indices = @transform_11, window_bounds = array<i64: 2, 1, 32>}, {pipeline_mode = #tpu.pipeline_mode<synchronous>, transform_indices = @transform_12, window_bounds = array<i64: 2, 32, 32>}, {pipeline_mode = #tpu.pipeline_mode<synchronous>, transform_indices = @transform_13, window_bounds = array<i64: 2, 1, 32>}, {pipeline_mode = #tpu.pipeline_mode<synchronous>, transform_indices = @transform_14, window_bounds = array<i64: 2, 1, 32>}, {pipeline_mode = #tpu.pipeline_mode<synchronous>, transform_indices = @transform_15, window_bounds = array<i64: 2, 1, 32>}, {pipeline_mode = #tpu.pipeline_mode<synchronous>, transform_indices = @transform_16, window_bounds = array<i64: 2, 1, 32>}, {pipeline_mode = #tpu.pipeline_mode<synchronous>, transform_indices = @transform_17, window_bounds = array<i64: 2, 1, 32>}, {pipeline_mode = #tpu.pipeline_mode<synchronous>, transform_indices = @transform_18, window_bounds = array<i64: 2, 32, 64>}, {pipeline_mode = #tpu.pipeline_mode<synchronous>, transform_indices = @transform_19, window_bounds = array<i64: 2, 1, 64>}, {pipeline_mode = #tpu.pipeline_mode<synchronous>, transform_indices = @transform_20, window_bounds = array<i64: 2, 64, 32>}, {pipeline_mode = #tpu.pipeline_mode<synchronous>, transform_indices = @transform_21, window_bounds = array<i64: 2, 1, 32>}, {pipeline_mode = #tpu.pipeline_mode<synchronous>, transform_indices = @transform_22, window_bounds = array<i64: 1, 32>}, {pipeline_mode = #tpu.pipeline_mode<synchronous>, transform_indices = @transform_23, window_bounds = array<i64: 1, 32>}, {pipeline_mode = #tpu.pipeline_mode<synchronous>, transform_indices = @transform_24, window_bounds = array<i64: 32, 32>}, {pipeline_mode = #tpu.pipeline_mode<synchronous>, transform_indices = @transform_25, window_bounds = array<i64: 1, 32>}, {pipeline_mode = #tpu.pipeline_mode<synchronous>, transform_indices = @transform_26, window_bounds = array<i64: 16, 32>}]} {
    %c0 = arith.constant 0 : index
    %c0_0 = arith.constant 0 : index
    %0 = vector.load %arg1[%c0, %c0_0] : memref<16x16xf32, #tpu.memory_space<vmem>>, vector<16x16xf32>
    %c0_1 = arith.constant 0 : index
    %c0_2 = arith.constant 0 : index
    %1 = vector.load %arg3[%c0_1, %c0_2] : memref<16x64xf32, #tpu.memory_space<vmem>>, vector<16x64xf32>
    %c0_3 = arith.constant 0 : index
    %c0_4 = arith.constant 0 : index
    %2 = vector.load %arg4[%c0_3, %c0_4] : memref<64x32xf32, #tpu.memory_space<vmem>>, vector<64x32xf32>
    %c0_5 = arith.constant 0 : index
    %c0_6 = arith.constant 0 : index
    %3 = vector.load %arg5[%c0_5, %c0_6] : memref<64x64xf32, #tpu.memory_space<vmem>>, vector<64x64xf32>
    %c0_7 = arith.constant 0 : index
    %c0_8 = arith.constant 0 : index
    %4 = vector.load %arg6[%c0_7, %c0_8] : memref<16x32xf32, #tpu.memory_space<vmem>>, vector<16x32xf32>
    %cst = arith.constant dense<0.000000e+00> : vector<16x32xf32>
    %5 = tpu.matmul %0, %4, %cst {dimension_numbers = #tpu.dot_dimension_numbers<[1], [0], [0], [1], [0, 0, 1, 1], [], []>} : vector<16x16xf32>, vector<16x32xf32>, vector<16x32xf32> -> vector<16x32xf32>
    %c0_9 = arith.constant 0 : index
    %c0_10 = arith.constant 0 : index
    %6 = vector.load %arg2[%c0_9, %c0_10] : memref<16x32xf32, #tpu.memory_space<vmem>>, vector<16x32xf32>
    %7 = arith.addf %5, %6 : vector<16x32xf32>
    %c0_11 = arith.constant 0 : index
    %c0_12 = arith.constant 0 : index
    %c0_13 = arith.constant 0 : index
    %8 = vector.load %arg7[%c0_11, %c0_12, %c0_13] : memref<2x32x32xf32, #tpu.memory_space<vmem>>, vector<1x32x32xf32>
    %9 = vector.shape_cast %8 : vector<1x32x32xf32> to vector<32x32xf32>
    %cst_14 = arith.constant dense<0.000000e+00> : vector<16x32xf32>
    %10 = tpu.matmul %7, %9, %cst_14 {dimension_numbers = #tpu.dot_dimension_numbers<[1], [0], [0], [1], [0, 0, 1, 1], [], []>} : vector<16x32xf32>, vector<32x32xf32>, vector<16x32xf32> -> vector<16x32xf32>
    %c0_15 = arith.constant 0 : index
    %c0_16 = arith.constant 0 : index
    %c0_17 = arith.constant 0 : index
    %11 = vector.load %arg8[%c0_15, %c0_16, %c0_17] : memref<2x1x32xf32, #tpu.memory_space<vmem>>, vector<1x1x32xf32>
    %12 = vector.shape_cast %11 : vector<1x1x32xf32> to vector<1x32xf32>
    %13 = vector.broadcast %12 : vector<1x32xf32> to vector<16x32xf32>
    %14 = arith.addf %10, %13 : vector<16x32xf32>
    %c0_18 = arith.constant 0 : index
    %c0_19 = arith.constant 0 : index
    %c0_20 = arith.constant 0 : index
    %15 = vector.load %arg9[%c0_18, %c0_19, %c0_20] : memref<2x32x32xf32, #tpu.memory_space<vmem>>, vector<1x32x32xf32>
    %16 = vector.shape_cast %15 : vector<1x32x32xf32> to vector<32x32xf32>
    %cst_21 = arith.constant dense<0.000000e+00> : vector<16x32xf32>
    %17 = tpu.matmul %7, %16, %cst_21 {dimension_numbers = #tpu.dot_dimension_numbers<[1], [0], [0], [1], [0, 0, 1, 1], [], []>} : vector<16x32xf32>, vector<32x32xf32>, vector<16x32xf32> -> vector<16x32xf32>
    %c0_22 = arith.constant 0 : index
    %c0_23 = arith.constant 0 : index
    %c0_24 = arith.constant 0 : index
    %18 = vector.load %arg10[%c0_22, %c0_23, %c0_24] : memref<2x1x32xf32, #tpu.memory_space<vmem>>, vector<1x1x32xf32>
    %19 = vector.shape_cast %18 : vector<1x1x32xf32> to vector<1x32xf32>
    %20 = vector.broadcast %19 : vector<1x32xf32> to vector<16x32xf32>
    %21 = arith.addf %17, %20 : vector<16x32xf32>
    %c0_25 = arith.constant 0 : index
    %c0_26 = arith.constant 0 : index
    %c0_27 = arith.constant 0 : index
    %22 = vector.load %arg11[%c0_25, %c0_26, %c0_27] : memref<2x32x32xf32, #tpu.memory_space<vmem>>, vector<1x32x32xf32>
    %23 = vector.shape_cast %22 : vector<1x32x32xf32> to vector<32x32xf32>
    %cst_28 = arith.constant dense<0.000000e+00> : vector<16x32xf32>
    %24 = tpu.matmul %7, %23, %cst_28 {dimension_numbers = #tpu.dot_dimension_numbers<[1], [0], [0], [1], [0, 0, 1, 1], [], []>} : vector<16x32xf32>, vector<32x32xf32>, vector<16x32xf32> -> vector<16x32xf32>
    %c0_29 = arith.constant 0 : index
    %c0_30 = arith.constant 0 : index
    %c0_31 = arith.constant 0 : index
    %25 = vector.load %arg12[%c0_29, %c0_30, %c0_31] : memref<2x1x32xf32, #tpu.memory_space<vmem>>, vector<1x1x32xf32>
    %26 = vector.shape_cast %25 : vector<1x1x32xf32> to vector<1x32xf32>
    %27 = vector.broadcast %26 : vector<1x32xf32> to vector<16x32xf32>
    %28 = arith.addf %24, %27 : vector<16x32xf32>
    %29 = tpu.concatenate %21, %21, %21, %21 in 0 : vector<16x32xf32>, vector<16x32xf32>, vector<16x32xf32>, vector<16x32xf32> -> vector<64x32xf32>
    %30 = arith.mulf %29, %2 : vector<64x32xf32>
    %31 = tpu.concatenate %28, %28, %28, %28 in 0 : vector<16x32xf32>, vector<16x32xf32>, vector<16x32xf32>, vector<16x32xf32> -> vector<64x32xf32>
    %32 = arith.mulf %31, %2 : vector<64x32xf32>
    %cst_32 = arith.constant 0.353553385 : f32
    %33 = vector.broadcast %cst_32 : f32 to vector<16x32xf32>
    %34 = arith.mulf %14, %33 : vector<16x32xf32>
    %cst_33 = arith.constant dense<0.000000e+00> : vector<16x64xf32>
    %35 = tpu.matmul %34, %30, %cst_33 {dimension_numbers = #tpu.dot_dimension_numbers<[1], [1], [0], [0], [0, 0, 1, 0], [], []>} : vector<16x32xf32>, vector<64x32xf32>, vector<16x64xf32> -> vector<16x64xf32>
    %36 = arith.addf %35, %1 : vector<16x64xf32>
    %cst_34 = arith.constant dense<0xFF800000> : vector<16xf32>
    %37 = vector.multi_reduction <maximumf>, %36, %cst_34 [1] : vector<16x64xf32> to vector<16xf32>
    %38 = vector.shape_cast %37 : vector<16xf32> to vector<16x1xf32>
    %39 = vector.broadcast %38 : vector<16x1xf32> to vector<16x64xf32>
    %40 = arith.subf %36, %39 : vector<16x64xf32>
    %41 = math.exp %40 : vector<16x64xf32>
    %cst_35 = arith.constant dense<0.000000e+00> : vector<16x64xf32>
    %42 = tpu.matmul %41, %3, %cst_35 {dimension_numbers = #tpu.dot_dimension_numbers<[1], [0], [0], [1], [0, 0, 1, 1], [], []>} : vector<16x64xf32>, vector<64x64xf32>, vector<16x64xf32> -> vector<16x64xf32>
    %cst_36 = arith.constant 1.000000e-30 : f32
    %43 = vector.broadcast %cst_36 : f32 to vector<16x64xf32>
    %44 = arith.maximumf %42, %43 : vector<16x64xf32>
    %45 = tpu.reciprocal %44 {approx = true} : vector<16x64xf32> -> vector<16x64xf32>
    %46 = arith.mulf %41, %45 : vector<16x64xf32>
    %cst_37 = arith.constant dense<0.000000e+00> : vector<16x32xf32>
    %47 = tpu.matmul %46, %32, %cst_37 {dimension_numbers = #tpu.dot_dimension_numbers<[1], [0], [0], [1], [0, 0, 1, 1], [], []>} : vector<16x64xf32>, vector<64x32xf32>, vector<16x32xf32> -> vector<16x32xf32>
    %c0_38 = arith.constant 0 : index
    %c0_39 = arith.constant 0 : index
    %c0_40 = arith.constant 0 : index
    %48 = vector.load %arg13[%c0_38, %c0_39, %c0_40] : memref<2x32x32xf32, #tpu.memory_space<vmem>>, vector<1x32x32xf32>
    %49 = vector.shape_cast %48 : vector<1x32x32xf32> to vector<32x32xf32>
    %cst_41 = arith.constant dense<0.000000e+00> : vector<16x32xf32>
    %50 = tpu.matmul %47, %49, %cst_41 {dimension_numbers = #tpu.dot_dimension_numbers<[1], [0], [0], [1], [0, 0, 1, 1], [], []>} : vector<16x32xf32>, vector<32x32xf32>, vector<16x32xf32> -> vector<16x32xf32>
    %c0_42 = arith.constant 0 : index
    %c0_43 = arith.constant 0 : index
    %c0_44 = arith.constant 0 : index
    %51 = vector.load %arg14[%c0_42, %c0_43, %c0_44] : memref<2x1x32xf32, #tpu.memory_space<vmem>>, vector<1x1x32xf32>
    %52 = vector.shape_cast %51 : vector<1x1x32xf32> to vector<1x32xf32>
    %53 = vector.broadcast %52 : vector<1x32xf32> to vector<16x32xf32>
    %54 = arith.addf %50, %53 : vector<16x32xf32>
    %55 = arith.addf %7, %54 : vector<16x32xf32>
    %c0_45 = arith.constant 0 : index
    %c0_46 = arith.constant 0 : index
    %c0_47 = arith.constant 0 : index
    %56 = vector.load %arg15[%c0_45, %c0_46, %c0_47] : memref<2x1x32xf32, #tpu.memory_space<vmem>>, vector<1x1x32xf32>
    %57 = vector.shape_cast %56 : vector<1x1x32xf32> to vector<1x32xf32>
    %c0_48 = arith.constant 0 : index
    %c0_49 = arith.constant 0 : index
    %c0_50 = arith.constant 0 : index
    %58 = vector.load %arg16[%c0_48, %c0_49, %c0_50] : memref<2x1x32xf32, #tpu.memory_space<vmem>>, vector<1x1x32xf32>
    %59 = vector.shape_cast %58 : vector<1x1x32xf32> to vector<1x32xf32>
    %cst_51 = arith.constant dense<0.000000e+00> : vector<16xf32>
    %60 = vector.multi_reduction <add>, %55, %cst_51 [1] : vector<16x32xf32> to vector<16xf32>
    %61 = vector.shape_cast %60 : vector<16xf32> to vector<16x1xf32>
    %cst_52 = arith.constant 3.200000e+01 : f32
    %62 = vector.broadcast %cst_52 : f32 to vector<16x1xf32>
    %63 = arith.divf %61, %62 : vector<16x1xf32>
    %64 = vector.broadcast %63 : vector<16x1xf32> to vector<16x32xf32>
    %65 = arith.subf %55, %64 : vector<16x32xf32>
    %66 = arith.mulf %65, %65 : vector<16x32xf32>
    %cst_53 = arith.constant dense<0.000000e+00> : vector<16xf32>
    %67 = vector.multi_reduction <add>, %66, %cst_53 [1] : vector<16x32xf32> to vector<16xf32>
    %68 = vector.shape_cast %67 : vector<16xf32> to vector<16x1xf32>
    %cst_54 = arith.constant 3.200000e+01 : f32
    %69 = vector.broadcast %cst_54 : f32 to vector<16x1xf32>
    %70 = arith.divf %68, %69 : vector<16x1xf32>
    %71 = vector.broadcast %63 : vector<16x1xf32> to vector<16x32xf32>
    %72 = arith.subf %55, %71 : vector<16x32xf32>
    %cst_55 = arith.constant 9.99999974E-6 : f32
    %73 = vector.broadcast %cst_55 : f32 to vector<16x1xf32>
    %74 = arith.addf %70, %73 : vector<16x1xf32>
    %75 = math.rsqrt %74 : vector<16x1xf32>
    %76 = vector.broadcast %75 : vector<16x1xf32> to vector<16x32xf32>
    %77 = arith.mulf %72, %76 : vector<16x32xf32>
    %78 = vector.broadcast %57 : vector<1x32xf32> to vector<16x32xf32>
    %79 = arith.mulf %77, %78 : vector<16x32xf32>
    %80 = vector.broadcast %59 : vector<1x32xf32> to vector<16x32xf32>
    %81 = arith.addf %79, %80 : vector<16x32xf32>
    %c0_56 = arith.constant 0 : index
    %c0_57 = arith.constant 0 : index
    %c0_58 = arith.constant 0 : index
    %82 = vector.load %arg19[%c0_56, %c0_57, %c0_58] : memref<2x32x64xf32, #tpu.memory_space<vmem>>, vector<1x32x64xf32>
    %83 = vector.shape_cast %82 : vector<1x32x64xf32> to vector<32x64xf32>
    %cst_59 = arith.constant dense<0.000000e+00> : vector<16x64xf32>
    %84 = tpu.matmul %81, %83, %cst_59 {dimension_numbers = #tpu.dot_dimension_numbers<[1], [0], [0], [1], [0, 0, 1, 1], [], []>} : vector<16x32xf32>, vector<32x64xf32>, vector<16x64xf32> -> vector<16x64xf32>
    %c0_60 = arith.constant 0 : index
    %c0_61 = arith.constant 0 : index
    %c0_62 = arith.constant 0 : index
    %85 = vector.load %arg20[%c0_60, %c0_61, %c0_62] : memref<2x1x64xf32, #tpu.memory_space<vmem>>, vector<1x1x64xf32>
    %86 = vector.shape_cast %85 : vector<1x1x64xf32> to vector<1x64xf32>
    %87 = vector.broadcast %86 : vector<1x64xf32> to vector<16x64xf32>
    %88 = arith.addf %84, %87 : vector<16x64xf32>
    %cst_63 = arith.constant 5.000000e-01 : f32
    %89 = vector.broadcast %cst_63 : f32 to vector<16x64xf32>
    %90 = arith.mulf %89, %88 : vector<16x64xf32>
    %cst_64 = arith.constant 0.707106769 : f32
    %91 = vector.broadcast %cst_64 : f32 to vector<16x64xf32>
    %92 = arith.mulf %88, %91 : vector<16x64xf32>
    %93 = math.absf %92 : vector<16x64xf32>
    %cst_65 = arith.constant 0.327591091 : f32
    %94 = vector.broadcast %cst_65 : f32 to vector<16x64xf32>
    %95 = arith.mulf %94, %93 : vector<16x64xf32>
    %cst_66 = arith.constant 1.000000e+00 : f32
    %96 = vector.broadcast %cst_66 : f32 to vector<16x64xf32>
    %97 = arith.addf %96, %95 : vector<16x64xf32>
    %cst_67 = arith.constant 1.000000e+00 : f32
    %98 = vector.broadcast %cst_67 : f32 to vector<16x64xf32>
    %99 = arith.divf %98, %97 : vector<16x64xf32>
    %cst_68 = arith.constant 1.06140542 : f32
    %100 = vector.broadcast %cst_68 : f32 to vector<16x64xf32>
    %101 = arith.mulf %100, %99 : vector<16x64xf32>
    %cst_69 = arith.constant -1.45315206 : f32
    %102 = vector.broadcast %cst_69 : f32 to vector<16x64xf32>
    %103 = arith.addf %101, %102 : vector<16x64xf32>
    %104 = arith.mulf %103, %99 : vector<16x64xf32>
    %cst_70 = arith.constant 1.42141378 : f32
    %105 = vector.broadcast %cst_70 : f32 to vector<16x64xf32>
    %106 = arith.addf %104, %105 : vector<16x64xf32>
    %107 = arith.mulf %106, %99 : vector<16x64xf32>
    %cst_71 = arith.constant -0.284496725 : f32
    %108 = vector.broadcast %cst_71 : f32 to vector<16x64xf32>
    %109 = arith.addf %107, %108 : vector<16x64xf32>
    %110 = arith.mulf %109, %99 : vector<16x64xf32>
    %cst_72 = arith.constant 0.254829586 : f32
    %111 = vector.broadcast %cst_72 : f32 to vector<16x64xf32>
    %112 = arith.addf %110, %111 : vector<16x64xf32>
    %113 = arith.mulf %112, %99 : vector<16x64xf32>
    %cst_73 = arith.constant 0.000000e+00 : f32
    %114 = vector.broadcast %cst_73 : f32 to vector<16x64xf32>
    %115 = arith.subf %114, %93 : vector<16x64xf32>
    %116 = arith.mulf %115, %93 : vector<16x64xf32>
    %117 = math.exp %116 : vector<16x64xf32>
    %118 = arith.mulf %113, %117 : vector<16x64xf32>
    %cst_74 = arith.constant 1.000000e+00 : f32
    %119 = vector.broadcast %cst_74 : f32 to vector<16x64xf32>
    %120 = arith.subf %119, %118 : vector<16x64xf32>
    %cst_75 = arith.constant 0.000000e+00 : f32
    %121 = vector.broadcast %cst_75 : f32 to vector<16x64xf32>
    %122 = arith.cmpf oge, %92, %121 : vector<16x64xf32>
    %cst_76 = arith.constant 0.000000e+00 : f32
    %123 = vector.broadcast %cst_76 : f32 to vector<16x64xf32>
    %124 = arith.subf %123, %120 : vector<16x64xf32>
    %125 = arith.select %122, %120, %124 : vector<16x64xi1>, vector<16x64xf32>
    %cst_77 = arith.constant 1.000000e+00 : f32
    %126 = vector.broadcast %cst_77 : f32 to vector<16x64xf32>
    %127 = arith.addf %126, %125 : vector<16x64xf32>
    %128 = arith.mulf %90, %127 : vector<16x64xf32>
    %c0_78 = arith.constant 0 : index
    %c0_79 = arith.constant 0 : index
    %c0_80 = arith.constant 0 : index
    %129 = vector.load %arg21[%c0_78, %c0_79, %c0_80] : memref<2x64x32xf32, #tpu.memory_space<vmem>>, vector<1x64x32xf32>
    %130 = vector.shape_cast %129 : vector<1x64x32xf32> to vector<64x32xf32>
    %cst_81 = arith.constant dense<0.000000e+00> : vector<16x32xf32>
    %131 = tpu.matmul %128, %130, %cst_81 {dimension_numbers = #tpu.dot_dimension_numbers<[1], [0], [0], [1], [0, 0, 1, 1], [], []>} : vector<16x64xf32>, vector<64x32xf32>, vector<16x32xf32> -> vector<16x32xf32>
    %c0_82 = arith.constant 0 : index
    %c0_83 = arith.constant 0 : index
    %c0_84 = arith.constant 0 : index
    %132 = vector.load %arg22[%c0_82, %c0_83, %c0_84] : memref<2x1x32xf32, #tpu.memory_space<vmem>>, vector<1x1x32xf32>
    %133 = vector.shape_cast %132 : vector<1x1x32xf32> to vector<1x32xf32>
    %134 = vector.broadcast %133 : vector<1x32xf32> to vector<16x32xf32>
    %135 = arith.addf %131, %134 : vector<16x32xf32>
    %136 = arith.addf %81, %135 : vector<16x32xf32>
    %c0_85 = arith.constant 0 : index
    %c0_86 = arith.constant 0 : index
    %c0_87 = arith.constant 0 : index
    %137 = vector.load %arg17[%c0_85, %c0_86, %c0_87] : memref<2x1x32xf32, #tpu.memory_space<vmem>>, vector<1x1x32xf32>
    %138 = vector.shape_cast %137 : vector<1x1x32xf32> to vector<1x32xf32>
    %c0_88 = arith.constant 0 : index
    %c0_89 = arith.constant 0 : index
    %c0_90 = arith.constant 0 : index
    %139 = vector.load %arg18[%c0_88, %c0_89, %c0_90] : memref<2x1x32xf32, #tpu.memory_space<vmem>>, vector<1x1x32xf32>
    %140 = vector.shape_cast %139 : vector<1x1x32xf32> to vector<1x32xf32>
    %cst_91 = arith.constant dense<0.000000e+00> : vector<16xf32>
    %141 = vector.multi_reduction <add>, %136, %cst_91 [1] : vector<16x32xf32> to vector<16xf32>
    %142 = vector.shape_cast %141 : vector<16xf32> to vector<16x1xf32>
    %cst_92 = arith.constant 3.200000e+01 : f32
    %143 = vector.broadcast %cst_92 : f32 to vector<16x1xf32>
    %144 = arith.divf %142, %143 : vector<16x1xf32>
    %145 = vector.broadcast %144 : vector<16x1xf32> to vector<16x32xf32>
    %146 = arith.subf %136, %145 : vector<16x32xf32>
    %147 = arith.mulf %146, %146 : vector<16x32xf32>
    %cst_93 = arith.constant dense<0.000000e+00> : vector<16xf32>
    %148 = vector.multi_reduction <add>, %147, %cst_93 [1] : vector<16x32xf32> to vector<16xf32>
    %149 = vector.shape_cast %148 : vector<16xf32> to vector<16x1xf32>
    %cst_94 = arith.constant 3.200000e+01 : f32
    %150 = vector.broadcast %cst_94 : f32 to vector<16x1xf32>
    %151 = arith.divf %149, %150 : vector<16x1xf32>
    %152 = vector.broadcast %144 : vector<16x1xf32> to vector<16x32xf32>
    %153 = arith.subf %136, %152 : vector<16x32xf32>
    %cst_95 = arith.constant 9.99999974E-6 : f32
    %154 = vector.broadcast %cst_95 : f32 to vector<16x1xf32>
    %155 = arith.addf %151, %154 : vector<16x1xf32>
    %156 = math.rsqrt %155 : vector<16x1xf32>
    %157 = vector.broadcast %156 : vector<16x1xf32> to vector<16x32xf32>
    %158 = arith.mulf %153, %157 : vector<16x32xf32>
    %159 = vector.broadcast %138 : vector<1x32xf32> to vector<16x32xf32>
    %160 = arith.mulf %158, %159 : vector<16x32xf32>
    %161 = vector.broadcast %140 : vector<1x32xf32> to vector<16x32xf32>
    %162 = arith.addf %160, %161 : vector<16x32xf32>
    %c1 = arith.constant 1 : index
    %c0_96 = arith.constant 0 : index
    %c0_97 = arith.constant 0 : index
    %163 = vector.load %arg7[%c1, %c0_96, %c0_97] : memref<2x32x32xf32, #tpu.memory_space<vmem>>, vector<1x32x32xf32>
    %164 = vector.shape_cast %163 : vector<1x32x32xf32> to vector<32x32xf32>
    %cst_98 = arith.constant dense<0.000000e+00> : vector<16x32xf32>
    %165 = tpu.matmul %162, %164, %cst_98 {dimension_numbers = #tpu.dot_dimension_numbers<[1], [0], [0], [1], [0, 0, 1, 1], [], []>} : vector<16x32xf32>, vector<32x32xf32>, vector<16x32xf32> -> vector<16x32xf32>
    %c1_99 = arith.constant 1 : index
    %c0_100 = arith.constant 0 : index
    %c0_101 = arith.constant 0 : index
    %166 = vector.load %arg8[%c1_99, %c0_100, %c0_101] : memref<2x1x32xf32, #tpu.memory_space<vmem>>, vector<1x1x32xf32>
    %167 = vector.shape_cast %166 : vector<1x1x32xf32> to vector<1x32xf32>
    %168 = vector.broadcast %167 : vector<1x32xf32> to vector<16x32xf32>
    %169 = arith.addf %165, %168 : vector<16x32xf32>
    %c1_102 = arith.constant 1 : index
    %c0_103 = arith.constant 0 : index
    %c0_104 = arith.constant 0 : index
    %170 = vector.load %arg9[%c1_102, %c0_103, %c0_104] : memref<2x32x32xf32, #tpu.memory_space<vmem>>, vector<1x32x32xf32>
    %171 = vector.shape_cast %170 : vector<1x32x32xf32> to vector<32x32xf32>
    %cst_105 = arith.constant dense<0.000000e+00> : vector<16x32xf32>
    %172 = tpu.matmul %162, %171, %cst_105 {dimension_numbers = #tpu.dot_dimension_numbers<[1], [0], [0], [1], [0, 0, 1, 1], [], []>} : vector<16x32xf32>, vector<32x32xf32>, vector<16x32xf32> -> vector<16x32xf32>
    %c1_106 = arith.constant 1 : index
    %c0_107 = arith.constant 0 : index
    %c0_108 = arith.constant 0 : index
    %173 = vector.load %arg10[%c1_106, %c0_107, %c0_108] : memref<2x1x32xf32, #tpu.memory_space<vmem>>, vector<1x1x32xf32>
    %174 = vector.shape_cast %173 : vector<1x1x32xf32> to vector<1x32xf32>
    %175 = vector.broadcast %174 : vector<1x32xf32> to vector<16x32xf32>
    %176 = arith.addf %172, %175 : vector<16x32xf32>
    %c1_109 = arith.constant 1 : index
    %c0_110 = arith.constant 0 : index
    %c0_111 = arith.constant 0 : index
    %177 = vector.load %arg11[%c1_109, %c0_110, %c0_111] : memref<2x32x32xf32, #tpu.memory_space<vmem>>, vector<1x32x32xf32>
    %178 = vector.shape_cast %177 : vector<1x32x32xf32> to vector<32x32xf32>
    %cst_112 = arith.constant dense<0.000000e+00> : vector<16x32xf32>
    %179 = tpu.matmul %162, %178, %cst_112 {dimension_numbers = #tpu.dot_dimension_numbers<[1], [0], [0], [1], [0, 0, 1, 1], [], []>} : vector<16x32xf32>, vector<32x32xf32>, vector<16x32xf32> -> vector<16x32xf32>
    %c1_113 = arith.constant 1 : index
    %c0_114 = arith.constant 0 : index
    %c0_115 = arith.constant 0 : index
    %180 = vector.load %arg12[%c1_113, %c0_114, %c0_115] : memref<2x1x32xf32, #tpu.memory_space<vmem>>, vector<1x1x32xf32>
    %181 = vector.shape_cast %180 : vector<1x1x32xf32> to vector<1x32xf32>
    %182 = vector.broadcast %181 : vector<1x32xf32> to vector<16x32xf32>
    %183 = arith.addf %179, %182 : vector<16x32xf32>
    %184 = tpu.concatenate %176, %176, %176, %176 in 0 : vector<16x32xf32>, vector<16x32xf32>, vector<16x32xf32>, vector<16x32xf32> -> vector<64x32xf32>
    %185 = arith.mulf %184, %2 : vector<64x32xf32>
    %186 = tpu.concatenate %183, %183, %183, %183 in 0 : vector<16x32xf32>, vector<16x32xf32>, vector<16x32xf32>, vector<16x32xf32> -> vector<64x32xf32>
    %187 = arith.mulf %186, %2 : vector<64x32xf32>
    %cst_116 = arith.constant 0.353553385 : f32
    %188 = vector.broadcast %cst_116 : f32 to vector<16x32xf32>
    %189 = arith.mulf %169, %188 : vector<16x32xf32>
    %cst_117 = arith.constant dense<0.000000e+00> : vector<16x64xf32>
    %190 = tpu.matmul %189, %185, %cst_117 {dimension_numbers = #tpu.dot_dimension_numbers<[1], [1], [0], [0], [0, 0, 1, 0], [], []>} : vector<16x32xf32>, vector<64x32xf32>, vector<16x64xf32> -> vector<16x64xf32>
    %191 = arith.addf %190, %1 : vector<16x64xf32>
    %cst_118 = arith.constant dense<0xFF800000> : vector<16xf32>
    %192 = vector.multi_reduction <maximumf>, %191, %cst_118 [1] : vector<16x64xf32> to vector<16xf32>
    %193 = vector.shape_cast %192 : vector<16xf32> to vector<16x1xf32>
    %194 = vector.broadcast %193 : vector<16x1xf32> to vector<16x64xf32>
    %195 = arith.subf %191, %194 : vector<16x64xf32>
    %196 = math.exp %195 : vector<16x64xf32>
    %cst_119 = arith.constant dense<0.000000e+00> : vector<16x64xf32>
    %197 = tpu.matmul %196, %3, %cst_119 {dimension_numbers = #tpu.dot_dimension_numbers<[1], [0], [0], [1], [0, 0, 1, 1], [], []>} : vector<16x64xf32>, vector<64x64xf32>, vector<16x64xf32> -> vector<16x64xf32>
    %cst_120 = arith.constant 1.000000e-30 : f32
    %198 = vector.broadcast %cst_120 : f32 to vector<16x64xf32>
    %199 = arith.maximumf %197, %198 : vector<16x64xf32>
    %200 = tpu.reciprocal %199 {approx = true} : vector<16x64xf32> -> vector<16x64xf32>
    %201 = arith.mulf %196, %200 : vector<16x64xf32>
    %cst_121 = arith.constant dense<0.000000e+00> : vector<16x32xf32>
    %202 = tpu.matmul %201, %187, %cst_121 {dimension_numbers = #tpu.dot_dimension_numbers<[1], [0], [0], [1], [0, 0, 1, 1], [], []>} : vector<16x64xf32>, vector<64x32xf32>, vector<16x32xf32> -> vector<16x32xf32>
    %c1_122 = arith.constant 1 : index
    %c0_123 = arith.constant 0 : index
    %c0_124 = arith.constant 0 : index
    %203 = vector.load %arg13[%c1_122, %c0_123, %c0_124] : memref<2x32x32xf32, #tpu.memory_space<vmem>>, vector<1x32x32xf32>
    %204 = vector.shape_cast %203 : vector<1x32x32xf32> to vector<32x32xf32>
    %cst_125 = arith.constant dense<0.000000e+00> : vector<16x32xf32>
    %205 = tpu.matmul %202, %204, %cst_125 {dimension_numbers = #tpu.dot_dimension_numbers<[1], [0], [0], [1], [0, 0, 1, 1], [], []>} : vector<16x32xf32>, vector<32x32xf32>, vector<16x32xf32> -> vector<16x32xf32>
    %c1_126 = arith.constant 1 : index
    %c0_127 = arith.constant 0 : index
    %c0_128 = arith.constant 0 : index
    %206 = vector.load %arg14[%c1_126, %c0_127, %c0_128] : memref<2x1x32xf32, #tpu.memory_space<vmem>>, vector<1x1x32xf32>
    %207 = vector.shape_cast %206 : vector<1x1x32xf32> to vector<1x32xf32>
    %208 = vector.broadcast %207 : vector<1x32xf32> to vector<16x32xf32>
    %209 = arith.addf %205, %208 : vector<16x32xf32>
    %210 = arith.addf %162, %209 : vector<16x32xf32>
    %c1_129 = arith.constant 1 : index
    %c0_130 = arith.constant 0 : index
    %c0_131 = arith.constant 0 : index
    %211 = vector.load %arg15[%c1_129, %c0_130, %c0_131] : memref<2x1x32xf32, #tpu.memory_space<vmem>>, vector<1x1x32xf32>
    %212 = vector.shape_cast %211 : vector<1x1x32xf32> to vector<1x32xf32>
    %c1_132 = arith.constant 1 : index
    %c0_133 = arith.constant 0 : index
    %c0_134 = arith.constant 0 : index
    %213 = vector.load %arg16[%c1_132, %c0_133, %c0_134] : memref<2x1x32xf32, #tpu.memory_space<vmem>>, vector<1x1x32xf32>
    %214 = vector.shape_cast %213 : vector<1x1x32xf32> to vector<1x32xf32>
    %cst_135 = arith.constant dense<0.000000e+00> : vector<16xf32>
    %215 = vector.multi_reduction <add>, %210, %cst_135 [1] : vector<16x32xf32> to vector<16xf32>
    %216 = vector.shape_cast %215 : vector<16xf32> to vector<16x1xf32>
    %cst_136 = arith.constant 3.200000e+01 : f32
    %217 = vector.broadcast %cst_136 : f32 to vector<16x1xf32>
    %218 = arith.divf %216, %217 : vector<16x1xf32>
    %219 = vector.broadcast %218 : vector<16x1xf32> to vector<16x32xf32>
    %220 = arith.subf %210, %219 : vector<16x32xf32>
    %221 = arith.mulf %220, %220 : vector<16x32xf32>
    %cst_137 = arith.constant dense<0.000000e+00> : vector<16xf32>
    %222 = vector.multi_reduction <add>, %221, %cst_137 [1] : vector<16x32xf32> to vector<16xf32>
    %223 = vector.shape_cast %222 : vector<16xf32> to vector<16x1xf32>
    %cst_138 = arith.constant 3.200000e+01 : f32
    %224 = vector.broadcast %cst_138 : f32 to vector<16x1xf32>
    %225 = arith.divf %223, %224 : vector<16x1xf32>
    %226 = vector.broadcast %218 : vector<16x1xf32> to vector<16x32xf32>
    %227 = arith.subf %210, %226 : vector<16x32xf32>
    %cst_139 = arith.constant 9.99999974E-6 : f32
    %228 = vector.broadcast %cst_139 : f32 to vector<16x1xf32>
    %229 = arith.addf %225, %228 : vector<16x1xf32>
    %230 = math.rsqrt %229 : vector<16x1xf32>
    %231 = vector.broadcast %230 : vector<16x1xf32> to vector<16x32xf32>
    %232 = arith.mulf %227, %231 : vector<16x32xf32>
    %233 = vector.broadcast %212 : vector<1x32xf32> to vector<16x32xf32>
    %234 = arith.mulf %232, %233 : vector<16x32xf32>
    %235 = vector.broadcast %214 : vector<1x32xf32> to vector<16x32xf32>
    %236 = arith.addf %234, %235 : vector<16x32xf32>
    %c1_140 = arith.constant 1 : index
    %c0_141 = arith.constant 0 : index
    %c0_142 = arith.constant 0 : index
    %237 = vector.load %arg19[%c1_140, %c0_141, %c0_142] : memref<2x32x64xf32, #tpu.memory_space<vmem>>, vector<1x32x64xf32>
    %238 = vector.shape_cast %237 : vector<1x32x64xf32> to vector<32x64xf32>
    %cst_143 = arith.constant dense<0.000000e+00> : vector<16x64xf32>
    %239 = tpu.matmul %236, %238, %cst_143 {dimension_numbers = #tpu.dot_dimension_numbers<[1], [0], [0], [1], [0, 0, 1, 1], [], []>} : vector<16x32xf32>, vector<32x64xf32>, vector<16x64xf32> -> vector<16x64xf32>
    %c1_144 = arith.constant 1 : index
    %c0_145 = arith.constant 0 : index
    %c0_146 = arith.constant 0 : index
    %240 = vector.load %arg20[%c1_144, %c0_145, %c0_146] : memref<2x1x64xf32, #tpu.memory_space<vmem>>, vector<1x1x64xf32>
    %241 = vector.shape_cast %240 : vector<1x1x64xf32> to vector<1x64xf32>
    %242 = vector.broadcast %241 : vector<1x64xf32> to vector<16x64xf32>
    %243 = arith.addf %239, %242 : vector<16x64xf32>
    %cst_147 = arith.constant 5.000000e-01 : f32
    %244 = vector.broadcast %cst_147 : f32 to vector<16x64xf32>
    %245 = arith.mulf %244, %243 : vector<16x64xf32>
    %cst_148 = arith.constant 0.707106769 : f32
    %246 = vector.broadcast %cst_148 : f32 to vector<16x64xf32>
    %247 = arith.mulf %243, %246 : vector<16x64xf32>
    %248 = math.absf %247 : vector<16x64xf32>
    %cst_149 = arith.constant 0.327591091 : f32
    %249 = vector.broadcast %cst_149 : f32 to vector<16x64xf32>
    %250 = arith.mulf %249, %248 : vector<16x64xf32>
    %cst_150 = arith.constant 1.000000e+00 : f32
    %251 = vector.broadcast %cst_150 : f32 to vector<16x64xf32>
    %252 = arith.addf %251, %250 : vector<16x64xf32>
    %cst_151 = arith.constant 1.000000e+00 : f32
    %253 = vector.broadcast %cst_151 : f32 to vector<16x64xf32>
    %254 = arith.divf %253, %252 : vector<16x64xf32>
    %cst_152 = arith.constant 1.06140542 : f32
    %255 = vector.broadcast %cst_152 : f32 to vector<16x64xf32>
    %256 = arith.mulf %255, %254 : vector<16x64xf32>
    %cst_153 = arith.constant -1.45315206 : f32
    %257 = vector.broadcast %cst_153 : f32 to vector<16x64xf32>
    %258 = arith.addf %256, %257 : vector<16x64xf32>
    %259 = arith.mulf %258, %254 : vector<16x64xf32>
    %cst_154 = arith.constant 1.42141378 : f32
    %260 = vector.broadcast %cst_154 : f32 to vector<16x64xf32>
    %261 = arith.addf %259, %260 : vector<16x64xf32>
    %262 = arith.mulf %261, %254 : vector<16x64xf32>
    %cst_155 = arith.constant -0.284496725 : f32
    %263 = vector.broadcast %cst_155 : f32 to vector<16x64xf32>
    %264 = arith.addf %262, %263 : vector<16x64xf32>
    %265 = arith.mulf %264, %254 : vector<16x64xf32>
    %cst_156 = arith.constant 0.254829586 : f32
    %266 = vector.broadcast %cst_156 : f32 to vector<16x64xf32>
    %267 = arith.addf %265, %266 : vector<16x64xf32>
    %268 = arith.mulf %267, %254 : vector<16x64xf32>
    %cst_157 = arith.constant 0.000000e+00 : f32
    %269 = vector.broadcast %cst_157 : f32 to vector<16x64xf32>
    %270 = arith.subf %269, %248 : vector<16x64xf32>
    %271 = arith.mulf %270, %248 : vector<16x64xf32>
    %272 = math.exp %271 : vector<16x64xf32>
    %273 = arith.mulf %268, %272 : vector<16x64xf32>
    %cst_158 = arith.constant 1.000000e+00 : f32
    %274 = vector.broadcast %cst_158 : f32 to vector<16x64xf32>
    %275 = arith.subf %274, %273 : vector<16x64xf32>
    %cst_159 = arith.constant 0.000000e+00 : f32
    %276 = vector.broadcast %cst_159 : f32 to vector<16x64xf32>
    %277 = arith.cmpf oge, %247, %276 : vector<16x64xf32>
    %cst_160 = arith.constant 0.000000e+00 : f32
    %278 = vector.broadcast %cst_160 : f32 to vector<16x64xf32>
    %279 = arith.subf %278, %275 : vector<16x64xf32>
    %280 = arith.select %277, %275, %279 : vector<16x64xi1>, vector<16x64xf32>
    %cst_161 = arith.constant 1.000000e+00 : f32
    %281 = vector.broadcast %cst_161 : f32 to vector<16x64xf32>
    %282 = arith.addf %281, %280 : vector<16x64xf32>
    %283 = arith.mulf %245, %282 : vector<16x64xf32>
    %c1_162 = arith.constant 1 : index
    %c0_163 = arith.constant 0 : index
    %c0_164 = arith.constant 0 : index
    %284 = vector.load %arg21[%c1_162, %c0_163, %c0_164] : memref<2x64x32xf32, #tpu.memory_space<vmem>>, vector<1x64x32xf32>
    %285 = vector.shape_cast %284 : vector<1x64x32xf32> to vector<64x32xf32>
    %cst_165 = arith.constant dense<0.000000e+00> : vector<16x32xf32>
    %286 = tpu.matmul %283, %285, %cst_165 {dimension_numbers = #tpu.dot_dimension_numbers<[1], [0], [0], [1], [0, 0, 1, 1], [], []>} : vector<16x64xf32>, vector<64x32xf32>, vector<16x32xf32> -> vector<16x32xf32>
    %c1_166 = arith.constant 1 : index
    %c0_167 = arith.constant 0 : index
    %c0_168 = arith.constant 0 : index
    %287 = vector.load %arg22[%c1_166, %c0_167, %c0_168] : memref<2x1x32xf32, #tpu.memory_space<vmem>>, vector<1x1x32xf32>
    %288 = vector.shape_cast %287 : vector<1x1x32xf32> to vector<1x32xf32>
    %289 = vector.broadcast %288 : vector<1x32xf32> to vector<16x32xf32>
    %290 = arith.addf %286, %289 : vector<16x32xf32>
    %291 = arith.addf %236, %290 : vector<16x32xf32>
    %c1_169 = arith.constant 1 : index
    %c0_170 = arith.constant 0 : index
    %c0_171 = arith.constant 0 : index
    %292 = vector.load %arg17[%c1_169, %c0_170, %c0_171] : memref<2x1x32xf32, #tpu.memory_space<vmem>>, vector<1x1x32xf32>
    %293 = vector.shape_cast %292 : vector<1x1x32xf32> to vector<1x32xf32>
    %c1_172 = arith.constant 1 : index
    %c0_173 = arith.constant 0 : index
    %c0_174 = arith.constant 0 : index
    %294 = vector.load %arg18[%c1_172, %c0_173, %c0_174] : memref<2x1x32xf32, #tpu.memory_space<vmem>>, vector<1x1x32xf32>
    %295 = vector.shape_cast %294 : vector<1x1x32xf32> to vector<1x32xf32>
    %cst_175 = arith.constant dense<0.000000e+00> : vector<16xf32>
    %296 = vector.multi_reduction <add>, %291, %cst_175 [1] : vector<16x32xf32> to vector<16xf32>
    %297 = vector.shape_cast %296 : vector<16xf32> to vector<16x1xf32>
    %cst_176 = arith.constant 3.200000e+01 : f32
    %298 = vector.broadcast %cst_176 : f32 to vector<16x1xf32>
    %299 = arith.divf %297, %298 : vector<16x1xf32>
    %300 = vector.broadcast %299 : vector<16x1xf32> to vector<16x32xf32>
    %301 = arith.subf %291, %300 : vector<16x32xf32>
    %302 = arith.mulf %301, %301 : vector<16x32xf32>
    %cst_177 = arith.constant dense<0.000000e+00> : vector<16xf32>
    %303 = vector.multi_reduction <add>, %302, %cst_177 [1] : vector<16x32xf32> to vector<16xf32>
    %304 = vector.shape_cast %303 : vector<16xf32> to vector<16x1xf32>
    %cst_178 = arith.constant 3.200000e+01 : f32
    %305 = vector.broadcast %cst_178 : f32 to vector<16x1xf32>
    %306 = arith.divf %304, %305 : vector<16x1xf32>
    %307 = vector.broadcast %299 : vector<16x1xf32> to vector<16x32xf32>
    %308 = arith.subf %291, %307 : vector<16x32xf32>
    %cst_179 = arith.constant 9.99999974E-6 : f32
    %309 = vector.broadcast %cst_179 : f32 to vector<16x1xf32>
    %310 = arith.addf %306, %309 : vector<16x1xf32>
    %311 = math.rsqrt %310 : vector<16x1xf32>
    %312 = vector.broadcast %311 : vector<16x1xf32> to vector<16x32xf32>
    %313 = arith.mulf %308, %312 : vector<16x32xf32>
    %314 = vector.broadcast %293 : vector<1x32xf32> to vector<16x32xf32>
    %315 = arith.mulf %313, %314 : vector<16x32xf32>
    %316 = vector.broadcast %295 : vector<1x32xf32> to vector<16x32xf32>
    %317 = arith.addf %315, %316 : vector<16x32xf32>
    %c0_180 = arith.constant 0 : index
    %c0_181 = arith.constant 0 : index
    %318 = vector.load %arg23[%c0_180, %c0_181] : memref<1x32xf32, #tpu.memory_space<vmem>>, vector<1x32xf32>
    %c0_182 = arith.constant 0 : index
    %c0_183 = arith.constant 0 : index
    %319 = vector.load %arg24[%c0_182, %c0_183] : memref<1x32xf32, #tpu.memory_space<vmem>>, vector<1x32xf32>
    %cst_184 = arith.constant dense<0.000000e+00> : vector<16xf32>
    %320 = vector.multi_reduction <add>, %317, %cst_184 [1] : vector<16x32xf32> to vector<16xf32>
    %321 = vector.shape_cast %320 : vector<16xf32> to vector<16x1xf32>
    %cst_185 = arith.constant 3.200000e+01 : f32
    %322 = vector.broadcast %cst_185 : f32 to vector<16x1xf32>
    %323 = arith.divf %321, %322 : vector<16x1xf32>
    %324 = vector.broadcast %323 : vector<16x1xf32> to vector<16x32xf32>
    %325 = arith.subf %317, %324 : vector<16x32xf32>
    %326 = arith.mulf %325, %325 : vector<16x32xf32>
    %cst_186 = arith.constant dense<0.000000e+00> : vector<16xf32>
    %327 = vector.multi_reduction <add>, %326, %cst_186 [1] : vector<16x32xf32> to vector<16xf32>
    %328 = vector.shape_cast %327 : vector<16xf32> to vector<16x1xf32>
    %cst_187 = arith.constant 3.200000e+01 : f32
    %329 = vector.broadcast %cst_187 : f32 to vector<16x1xf32>
    %330 = arith.divf %328, %329 : vector<16x1xf32>
    %331 = vector.broadcast %323 : vector<16x1xf32> to vector<16x32xf32>
    %332 = arith.subf %317, %331 : vector<16x32xf32>
    %cst_188 = arith.constant 9.99999974E-6 : f32
    %333 = vector.broadcast %cst_188 : f32 to vector<16x1xf32>
    %334 = arith.addf %330, %333 : vector<16x1xf32>
    %335 = math.rsqrt %334 : vector<16x1xf32>
    %336 = vector.broadcast %335 : vector<16x1xf32> to vector<16x32xf32>
    %337 = arith.mulf %332, %336 : vector<16x32xf32>
    %338 = vector.broadcast %318 : vector<1x32xf32> to vector<16x32xf32>
    %339 = arith.mulf %337, %338 : vector<16x32xf32>
    %340 = vector.broadcast %319 : vector<1x32xf32> to vector<16x32xf32>
    %341 = arith.addf %339, %340 : vector<16x32xf32>
    %c0_189 = arith.constant 0 : index
    %c0_190 = arith.constant 0 : index
    %342 = vector.load %arg25[%c0_189, %c0_190] : memref<32x32xf32, #tpu.memory_space<vmem>>, vector<32x32xf32>
    %cst_191 = arith.constant dense<0.000000e+00> : vector<16x32xf32>
    %343 = tpu.matmul %341, %342, %cst_191 {dimension_numbers = #tpu.dot_dimension_numbers<[1], [0], [0], [1], [0, 0, 1, 1], [], []>} : vector<16x32xf32>, vector<32x32xf32>, vector<16x32xf32> -> vector<16x32xf32>
    %c0_192 = arith.constant 0 : index
    %c0_193 = arith.constant 0 : index
    %344 = vector.load %arg26[%c0_192, %c0_193] : memref<1x32xf32, #tpu.memory_space<vmem>>, vector<1x32xf32>
    %345 = vector.broadcast %344 : vector<1x32xf32> to vector<16x32xf32>
    %346 = arith.addf %343, %345 : vector<16x32xf32>
    %c0_194 = arith.constant 0 : index
    %c0_195 = arith.constant 0 : index
    %347 = vector.load %arg27[%c0_194, %c0_195] : memref<16x32xf32, #tpu.memory_space<vmem>>, vector<16x32xf32>
    tpu.vector_store %arg27[%c0_194, %c0_195], %346 {strides = array<i32>} : memref<16x32xf32, #tpu.memory_space<vmem>>, vector<16x32xf32>,
    return
  }
  func.func @transform_0(%arg0: i32) -> (i32, i32) {
    %c0_i32 = arith.constant 0 : i32
    %c0_i32_0 = arith.constant 0 : i32
    %c0_i32_1 = arith.constant 0 : i32
    return %c0_i32, %c0_i32_0 : i32, i32
  }
  func.func @transform_1(%arg0: i32) -> (i32, i32) {
    %c0_i32 = arith.constant 0 : i32
    %c0_i32_0 = arith.constant 0 : i32
    %c0_i32_1 = arith.constant 0 : i32
    return %c0_i32, %c0_i32_0 : i32, i32
  }
  func.func @transform_2(%arg0: i32) -> (i32, i32) {
    %c0_i32 = arith.constant 0 : i32
    %c0_i32_0 = arith.constant 0 : i32
    %c0_i32_1 = arith.constant 0 : i32
    return %c0_i32, %c0_i32_0 : i32, i32
  }
  func.func @transform_3(%arg0: i32) -> (i32, i32) {
    %c0_i32 = arith.constant 0 : i32
    %c0_i32_0 = arith.constant 0 : i32
    %c0_i32_1 = arith.constant 0 : i32
    return %c0_i32, %c0_i32_0 : i32, i32
  }
  func.func @transform_4(%arg0: i32) -> (i32, i32) {
    %c0_i32 = arith.constant 0 : i32
    %c0_i32_0 = arith.constant 0 : i32
    %c0_i32_1 = arith.constant 0 : i32
    return %c0_i32, %c0_i32_0 : i32, i32
  }
  func.func @transform_5(%arg0: i32) -> (i32, i32) {
    %c0_i32 = arith.constant 0 : i32
    %c0_i32_0 = arith.constant 0 : i32
    %c0_i32_1 = arith.constant 0 : i32
    return %c0_i32, %c0_i32_0 : i32, i32
  }
  func.func @transform_6(%arg0: i32) -> (i32, i32, i32) {
    %c0_i32 = arith.constant 0 : i32
    %c0_i32_0 = arith.constant 0 : i32
    %c0_i32_1 = arith.constant 0 : i32
    %c0_i32_2 = arith.constant 0 : i32
    return %c0_i32, %c0_i32_0, %c0_i32_1 : i32, i32, i32
  }
  func.func @transform_7(%arg0: i32) -> (i32, i32, i32) {
    %c0_i32 = arith.constant 0 : i32
    %c0_i32_0 = arith.constant 0 : i32
    %c0_i32_1 = arith.constant 0 : i32
    %c0_i32_2 = arith.constant 0 : i32
    return %c0_i32, %c0_i32_0, %c0_i32_1 : i32, i32, i32
  }
  func.func @transform_8(%arg0: i32) -> (i32, i32, i32) {
    %c0_i32 = arith.constant 0 : i32
    %c0_i32_0 = arith.constant 0 : i32
    %c0_i32_1 = arith.constant 0 : i32
    %c0_i32_2 = arith.constant 0 : i32
    return %c0_i32, %c0_i32_0, %c0_i32_1 : i32, i32, i32
  }
  func.func @transform_9(%arg0: i32) -> (i32, i32, i32) {
    %c0_i32 = arith.constant 0 : i32
    %c0_i32_0 = arith.constant 0 : i32
    %c0_i32_1 = arith.constant 0 : i32
    %c0_i32_2 = arith.constant 0 : i32
    return %c0_i32, %c0_i32_0, %c0_i32_1 : i32, i32, i32
  }
  func.func @transform_10(%arg0: i32) -> (i32, i32, i32) {
    %c0_i32 = arith.constant 0 : i32
    %c0_i32_0 = arith.constant 0 : i32
    %c0_i32_1 = arith.constant 0 : i32
    %c0_i32_2 = arith.constant 0 : i32
    return %c0_i32, %c0_i32_0, %c0_i32_1 : i32, i32, i32
  }
  func.func @transform_11(%arg0: i32) -> (i32, i32, i32) {
    %c0_i32 = arith.constant 0 : i32
    %c0_i32_0 = arith.constant 0 : i32
    %c0_i32_1 = arith.constant 0 : i32
    %c0_i32_2 = arith.constant 0 : i32
    return %c0_i32, %c0_i32_0, %c0_i32_1 : i32, i32, i32
  }
  func.func @transform_12(%arg0: i32) -> (i32, i32, i32) {
    %c0_i32 = arith.constant 0 : i32
    %c0_i32_0 = arith.constant 0 : i32
    %c0_i32_1 = arith.constant 0 : i32
    %c0_i32_2 = arith.constant 0 : i32
    return %c0_i32, %c0_i32_0, %c0_i32_1 : i32, i32, i32
  }
  func.func @transform_13(%arg0: i32) -> (i32, i32, i32) {
    %c0_i32 = arith.constant 0 : i32
    %c0_i32_0 = arith.constant 0 : i32
    %c0_i32_1 = arith.constant 0 : i32
    %c0_i32_2 = arith.constant 0 : i32
    return %c0_i32, %c0_i32_0, %c0_i32_1 : i32, i32, i32
  }
  func.func @transform_14(%arg0: i32) -> (i32, i32, i32) {
    %c0_i32 = arith.constant 0 : i32
    %c0_i32_0 = arith.constant 0 : i32
    %c0_i32_1 = arith.constant 0 : i32
    %c0_i32_2 = arith.constant 0 : i32
    return %c0_i32, %c0_i32_0, %c0_i32_1 : i32, i32, i32
  }
  func.func @transform_15(%arg0: i32) -> (i32, i32, i32) {
    %c0_i32 = arith.constant 0 : i32
    %c0_i32_0 = arith.constant 0 : i32
    %c0_i32_1 = arith.constant 0 : i32
    %c0_i32_2 = arith.constant 0 : i32
    return %c0_i32, %c0_i32_0, %c0_i32_1 : i32, i32, i32
  }
  func.func @transform_16(%arg0: i32) -> (i32, i32, i32) {
    %c0_i32 = arith.constant 0 : i32
    %c0_i32_0 = arith.constant 0 : i32
    %c0_i32_1 = arith.constant 0 : i32
    %c0_i32_2 = arith.constant 0 : i32
    return %c0_i32, %c0_i32_0, %c0_i32_1 : i32, i32, i32
  }
  func.func @transform_17(%arg0: i32) -> (i32, i32, i32) {
    %c0_i32 = arith.constant 0 : i32
    %c0_i32_0 = arith.constant 0 : i32
    %c0_i32_1 = arith.constant 0 : i32
    %c0_i32_2 = arith.constant 0 : i32
    return %c0_i32, %c0_i32_0, %c0_i32_1 : i32, i32, i32
  }
  func.func @transform_18(%arg0: i32) -> (i32, i32, i32) {
    %c0_i32 = arith.constant 0 : i32
    %c0_i32_0 = arith.constant 0 : i32
    %c0_i32_1 = arith.constant 0 : i32
    %c0_i32_2 = arith.constant 0 : i32
    return %c0_i32, %c0_i32_0, %c0_i32_1 : i32, i32, i32
  }
  func.func @transform_19(%arg0: i32) -> (i32, i32, i32) {
    %c0_i32 = arith.constant 0 : i32
    %c0_i32_0 = arith.constant 0 : i32
    %c0_i32_1 = arith.constant 0 : i32
    %c0_i32_2 = arith.constant 0 : i32
    return %c0_i32, %c0_i32_0, %c0_i32_1 : i32, i32, i32
  }
  func.func @transform_20(%arg0: i32) -> (i32, i32, i32) {
    %c0_i32 = arith.constant 0 : i32
    %c0_i32_0 = arith.constant 0 : i32
    %c0_i32_1 = arith.constant 0 : i32
    %c0_i32_2 = arith.constant 0 : i32
    return %c0_i32, %c0_i32_0, %c0_i32_1 : i32, i32, i32
  }
  func.func @transform_21(%arg0: i32) -> (i32, i32, i32) {
    %c0_i32 = arith.constant 0 : i32
    %c0_i32_0 = arith.constant 0 : i32
    %c0_i32_1 = arith.constant 0 : i32
    %c0_i32_2 = arith.constant 0 : i32
    return %c0_i32, %c0_i32_0, %c0_i32_1 : i32, i32, i32
  }
  func.func @transform_22(%arg0: i32) -> (i32, i32) {
    %c0_i32 = arith.constant 0 : i32
    %c0_i32_0 = arith.constant 0 : i32
    %c0_i32_1 = arith.constant 0 : i32
    return %c0_i32, %c0_i32_0 : i32, i32
  }
  func.func @transform_23(%arg0: i32) -> (i32, i32) {
    %c0_i32 = arith.constant 0 : i32
    %c0_i32_0 = arith.constant 0 : i32
    %c0_i32_1 = arith.constant 0 : i32
    return %c0_i32, %c0_i32_0 : i32, i32
  }
  func.func @transform_24(%arg0: i32) -> (i32, i32) {
    %c0_i32 = arith.constant 0 : i32
    %c0_i32_0 = arith.constant 0 : i32
    %c0_i32_1 = arith.constant 0 : i32
    return %c0_i32, %c0_i32_0 : i32, i32
  }
  func.func @transform_25(%arg0: i32) -> (i32, i32) {
    %c0_i32 = arith.constant 0 : i32
    %c0_i32_0 = arith.constant 0 : i32
    %c0_i32_1 = arith.constant 0 : i32
    return %c0_i32, %c0_i32_0 : i32, i32
  }
  func.func @transform_26(%arg0: i32) -> (i32, i32) {
    %c0_i32 = arith.constant 0 : i32
    %c0_i32_0 = arith.constant 0 : i32
    %c0_i32_1 = arith.constant 0 : i32
    return %c0_i32, %c0_i32_0 : i32, i32
  }
}

</mosaic_0001>

<bundles_post_ra>
// kernel: speech_model_forward.1
= control target key start
LH: loop header
LB: loop body
LE: loop exit
PB: predicated region body
PF: predicated region fallthrough
CT: control target
= control target key end

     0   :  { %s3906_s0 = inlined_call_operand.vmem [shape: f32[16,16], index: 0, kind: input, shape index: {}]   ;;  %s3907_s1 = inlined_call_operand.vmem [shape: f32[16,32], index: 1, kind: input, shape index: {}]   ;;  %s3908_s2 = inlined_call_operand.vmem [shape: f32[16,64], index: 2, kind: input, shape index: {}]   ;;  %s3909_s3 = inlined_call_operand.vmem [shape: f32[64,32], index: 3, kind: input, shape index: {}]   ;;  %s3910_s4 = inlined_call_operand.vmem [shape: f32[64,64], index: 4, kind: input, shape index: {}]   ;;  %s3911_s5 = inlined_call_operand.vmem [shape: f32[16,32], index: 5, kind: input, shape index: {}]   ;;  %s3912_s6 = inlined_call_operand.vmem [shape: f32[2,32,32], index: 6, kind: input, shape index: {}]   ;;  %s3913_s7 = inlined_call_operand.vmem [shape: f32[2,1,32], index: 7, kind: input, shape index: {}]   ;;  %s3914_s8 = inlined_call_operand.vmem [shape: f32[2,32,32], index: 8, kind: input, shape index: {}]   ;;  %s3915_s9 = inlined_call_operand.vmem [shape: f32[2,1,32], index: 9, kind: input, shape index: {}]   ;;  %s3916_s10 = inlined_call_operand.vmem [shape: f32[2,32,32], index: 10, kind: input, shape index: {}]   ;;  %s3917_s11 = inlined_call_operand.vmem [shape: f32[2,1,32], index: 11, kind: input, shape index: {}]   ;;  %s3918_s12 = inlined_call_operand.vmem [shape: f32[2,32,32], index: 12, kind: input, shape index: {}]   ;;  %s3919_s13 = inlined_call_operand.vmem [shape: f32[2,1,32], index: 13, kind: input, shape index: {}]   ;;  %s3920_s14 = inlined_call_operand.vmem [shape: f32[2,1,32], index: 14, kind: input, shape index: {}]   ;;  %s3921_s15 = inlined_call_operand.vmem [shape: f32[2,1,32], index: 15, kind: input, shape index: {}]   ;;  %s3922_s16 = inlined_call_operand.vmem [shape: f32[2,1,32], index: 16, kind: input, shape index: {}]   ;;  %s3923_s17 = inlined_call_operand.vmem [shape: f32[2,1,32], index: 17, kind: input, shape index: {}]   ;;  %s3924_s18 = inlined_call_operand.vmem [shape: f32[2,32,64], index: 18, kind: input, shape index: {}]   ;;  %s3925_s19 = inlined_call_operand.vmem [shape: f32[2,1,64], index: 19, kind: input, shape index: {}]   ;;  %s3926_s20 = inlined_call_operand.vmem [shape: f32[2,64,32], index: 20, kind: input, shape index: {}]   ;;  %s3927_s21 = inlined_call_operand.vmem [shape: f32[2,1,32], index: 21, kind: input, shape index: {}]   ;;  %s3928_s22 = inlined_call_operand.vmem [shape: f32[1,32], index: 22, kind: input, shape index: {}]   ;;  %s3929_s23 = inlined_call_operand.vmem [shape: f32[1,32], index: 23, kind: input, shape index: {}]   ;;  %s3930_s24 = inlined_call_operand.vmem [shape: f32[32,32], index: 24, kind: input, shape index: {}]   ;;  %s3931_s25 = inlined_call_operand.vmem [shape: f32[1,32], index: 25, kind: input, shape index: {}]   ;;  %s3932_s26 = inlined_call_operand.hbm [shape: f32[16,32], index: 26, kind: output, shape index: {}]  }
   0x1   :  { %3945 = sst [smem:[#allocation5_spill]] %s3906_s0 }
   0x2   :  { %3946 = sst [smem:[#allocation6_spill]] %s3907_s1 }
   0x3   :  { %3947 = sst [smem:[#allocation7_spill]] %s3908_s2 }
   0x4   :  { %3948 = sst [smem:[#allocation8_spill]] %s3909_s3 }
   0x5   :  { %3949 = sst [smem:[#allocation9_spill]] %s3910_s4 }
   0x6   :  { %3950 = sst [smem:[#allocation10_spill]] %s3911_s5 }
   0x7   :  { %3951 = sst [smem:[#allocation11_spill]] %s3912_s6 }
   0x8   :  { %3952 = sst [smem:[#allocation12_spill]] %s3913_s7 }
   0x9   :  { %3953 = sst [smem:[#allocation13_spill]] %s3914_s8 }
   0xa   :  { %3954 = sst [smem:[#allocation14_spill]] %s3915_s9 }
   0xb   :  { %3955 = sst [smem:[#allocation15_spill]] %s3916_s10 }
   0xc   :  { %3956 = sst [smem:[#allocation16_spill]] %s3932_s26 }
   0xd   :  { %s3957_s7 = sld [smem:[#allocation10_spill]]  ;;  %s3958_s0 = sld [smem:[#allocation5_spill]]  ;;  %vm108_vm0 = vcmask 130048  }
   0xe   :  { %s3959_s2 = sld [smem:[#allocation11_spill]]  ;;  %s3960_s27 = sld [smem:[#allocation13_spill]] }
  0x13   :  { %v104_v0 = vld [vmem:[%s3957_s7] sm:$0xff]  ;;  %v105_v1 = vld [vmem:[%s3957_s7 + $0x8] sm:$0xff] }
  0x14   :  { %v84_v2 = vld [vmem:[%s3958_s0] sm:$0xff]  ;;  %v2896_v3 = vpack.c.bf16 %v105_v1, %v104_v0  ;;  %v191_v5 = vld [vmem:[%s3959_s2 + $0x8] sm:$0xff] }
  0x15   :  { %2620 = vmatprep.mubr.msk.f32.mxu0 %vm108_vm0, %v84_v2  ;;  %v190_v4 = vld [vmem:[%s3959_s2] sm:$0xff]  ;;  %v284_v8 = vld [vmem:[%s3960_s27 + $0x8] sm:$0xff] }
  0x16   :  { %v2900_v6 = vpack.c.bf16 %v191_v5, %v190_v4  ;;  %v283_v7 = vld [vmem:[%s3960_s27] sm:$0xff]  ;;  %2897 = vmatprep.subr.bf16.mxu0 %v2896_v3 }
  0x17   :  { %v2908_v9 = vpack.c.bf16 %v284_v8, %v283_v7 }
  0x18   :  { %31 = vsyncpa [#allocation3], 0  ;;  %2899 = vmatpush3.bf16.msra.mxu0 %v2896_v3  ;;  %v85_v10 = vld [vmem:[%s3958_s0 + $0x8] sm:$0xff]  ;;  %2901 = vmatprep.subr.bf16.mxu1 %v2900_v6  ;;  %v192_v11 = vld [vmem:[%s3959_s2 + $0x10] sm:$0xff]  ;;  %s3961_s7 = sld [smem:[#allocation15_spill]]  ;;  %s3962_s9 = sld [smem:[#allocation6_spill]] }
  0x19   :  { %2903 = vmatpush3.bf16.msra.mxu1 %v2900_v6  ;;  %2909 = vmatprep.subr.bf16.mxu0 %v2908_v9  ;;  %v193_v12 = vld [vmem:[%s3959_s2 + $0x18] sm:$0xff]  ;;  %v285_v14 = vld [vmem:[%s3960_s27 + $0x10] sm:$0xff]  ;;  %vm201_vm1 = vcmask 261120   ;;  %s3963_s8 = sld [smem:[#allocation9_spill]]  ;;  %s3964_s10 = sld [smem:[#allocation14_spill]]  ;;  %vm578_vm3 = vcmask 523264  }
  0x1a   :  { %v2904_v13 = vpack.c.bf16 %v193_v12, %v192_v11  ;;  %v286_v15 = vld [vmem:[%s3960_s27 + $0x18] sm:$0xff]  ;;  %s3965_s1 = sld [smem:[#allocation12_spill]]  ;;  %s3966_s28 = sld [smem:[#allocation8_spill]]  ;;  %vm3517_vm2 = vmpackc.low %vm201_vm1, %vm201_vm1  ;;  %v2357_v4 = vld [vmem:[%s3917_s11] ss:$0 sm:$0xff] }
  0x1b   :  { %2621 = vmatmul.mubr.msk.f32.vlgmr.msra.gmra.mrb[0].mxu0 %vm108_vm0, %v85_v10  ;;  %v2912_v16 = vpack.c.bf16 %v286_v15, %v285_v14  ;;  %s3969_s6 = sld [smem:[#allocation7_spill]] }
  0x1c   :  { %2911 = vmatpush3.bf16.msra.mxu0 %v2908_v9  ;;  %2905 = vmatprep.subr.bf16.mxu1 %v2904_v13 }
  0x1d   :  { %2907 = vmatpush3.bf16.msra.mxu1 %v2904_v13  ;;  %2913 = vmatprep.subr.bf16.mxu0 %v2912_v16 }
  0x1e   :  { %v369_v17 = vld [vmem:[%s3961_s7] sm:$0xff]  ;;  %v370_v18 = vld [vmem:[%s3961_s7 + $0x8] sm:$0xff]  ;;  %v371_v23 = vld [vmem:[%s3961_s7 + $0x10] sm:$0xff] }
  0x1f   :  { %v2916_v19 = vpack.c.bf16 %v370_v18, %v369_v17  ;;  %v106_v20 = vld [vmem:[%s3962_s9] sm:$0xff]  ;;  %v107_v21 = vld [vmem:[%s3962_s9 + $0x8] sm:$0xff]  ;;  %v372_v24 = vld [vmem:[%s3961_s7 + $0x18] sm:$0xff] }
  0x20   :  { %2915 = vmatpush3.bf16.msra.mxu0 %v2912_v16  ;;  %v2920_v28 = vpack.c.bf16 %v372_v24, %v371_v23  ;;  %v96_v29 = vld [vmem:[%s3963_s8] sm:$0xff]  ;;  %v97_v30 = vld [vmem:[%s3963_s8 + $0x8] sm:$0xff]  ;;  %v98_v32 = vld [vmem:[%s3963_s8 + $0x10] sm:$0xff] }
  0x21   :  { %2917 = vmatprep.subr.bf16.mxu1 %v2916_v19  ;;  %v3427_v31 = vpack.c.bf16 %v97_v30, %v96_v29  ;;  %v99_v33 = vld [vmem:[%s3963_s8 + $0x18] sm:$0xff]  ;;  %v100_v35 = vld [vmem:[%s3963_s8 + $0x20] sm:$0xff]  ;;  %v101_v36 = vld [vmem:[%s3963_s8 + $0x28] sm:$0xff] }
  0x22   :  { %v3437_v34 = vpack.c.bf16 %v99_v33, %v98_v32  ;;  %v3445_v37 = vpack.c.bf16 %v101_v36, %v100_v35  ;;  %v102_v38 = vld [vmem:[%s3963_s8 + $0x30] sm:$0xff]  ;;  %v103_v39 = vld [vmem:[%s3963_s8 + $0x38] sm:$0xff]  ;;  %v2354_v41 = vld [vmem:[%s3964_s10] ss:$0 sm:$0xff] }
  0x23   :  { %v3456_v40 = vpack.c.bf16 %v103_v39, %v102_v38  ;;  %v2351_v42 = vld [vmem:[%s3965_s1] ss:$0 sm:$0xff]  ;;  %v3470_v44 = vld [vmem:[%s3966_s28 + $0x8] sm:$0xff]  ;;  %v3475_v45 = vld [vmem:[%s3966_s28 + $0x18] sm:$0xff] }
  0x24   :  { %v3480_v46 = vld [vmem:[%s3966_s28 + $0x28] sm:$0xff]  ;;  %v3485_v48 = vld [vmem:[%s3966_s28 + $0x38] sm:$0xff]  ;;  %v3490_v51 = vld [vmem:[%s3966_s28] sm:$0xff] }
  0x25   :  { %v3495_v52 = vld [vmem:[%s3966_s28 + $0x10] sm:$0xff]  ;;  %v3500_v55 = vld [vmem:[%s3966_s28 + $0x20] sm:$0xff]  ;;  %v3558_v32 = vld [vmem:[%s3969_s6 + $0x8] sm:$0xff] }
  0x26   :  { %v3505_v56 = vld [vmem:[%s3966_s28 + $0x30] sm:$0xff]  ;;  %v3553_v29 = vld [vmem:[%s3969_s6] sm:$0xff] }
  0xee   :  { %v2622_v22 = vpop.f32.mrb[0].mxu0 }
  0xef   :  { %v181_v25 = vpop.f32.mrb[1].mxu0  ;;  %v3407_v27 = vadd.f32 %v2622_v22, %v107_v21 }
  0xf0   :  { %v3405_v26 = vadd.f32 %v181_v25, %v106_v20 }
  0xf2   :  { %2631 = vmatprep.mubr.msk.f32.mxu1 %vm201_vm1, %v3405_v26  ;;  %2642 = vmatprep.mubr.msk.f32.mxu0 %vm201_vm1, %v3405_v26 }
  0xf3   :  { %2632 = vmatmul.mubr.msk.f32.vlgmr.msra.gmra.mrb[0].mxu1 %vm201_vm1, %v3407_v27  ;;  %2643 = vmatmul.mubr.msk.f32.vlgmr.msra.gmra.mrb[2].mxu0 %vm201_vm1, %v3407_v27 }
  0xf4   :  { %2919 = vmatpush3.bf16.msra.mxu1 %v2916_v19  ;;  %2653 = vmatprep.mubr.msk.f32.mxu1 %vm201_vm1, %v3405_v26 }
  0xf5   :  { %2921 = vmatprep.subr.bf16.mxu1 %v2920_v28 }
  0xf8   :  { %2923 = vmatpush3.bf16.msra.mxu1 %v2920_v28 }
  0xf9   :  { %2949 = vmatprep.subr.bf16.mxu1 %v3427_v31 }
  0xfb   :  { %2654 = vmatmul.mubr.msk.f32.vlgmr.msra.gmra.mrb[2].mxu1 %vm201_vm1, %v3407_v27 }
  0xfc   :  { %2951 = vmatpush3.bf16.msra.mxu1 %v3427_v31 }
  0xfd   :  { %2953 = vmatprep.subr.bf16.mxu1 %v3437_v34 }
 0x100   :  { %2955 = vmatpush3.bf16.msra.mxu1 %v3437_v34 }
 0x101   :  { %2957 = vmatprep.subr.bf16.mxu1 %v3445_v37 }
 0x104   :  { %2959 = vmatpush3.bf16.msra.mxu1 %v3445_v37 }
 0x105   :  { %2961 = vmatprep.subr.bf16.mxu1 %v3456_v40 }
 0x108   :  { %2963 = vmatpush3.bf16.msra.mxu1 %v3456_v40 }
 0x1c6   :  { %v2633_v43 = vpop.f32.mrb[0].mxu1  ;;  %v2644_v47 = vpop.f32.mrb[2].mxu0 }
 0x1c7   :  { %v366_v49 = vadd.f32 %v2644_v47, %v2354_v41  ;;  %v274_v50 = vpop.f32.mrb[1].mxu1  ;;  %v360_v53 = vpop.f32.mrb[3].mxu0  ;;  %v280_v25 = vadd.f32 %v2633_v43, %v2351_v42 }
 0x1c8   :  { %v275_v54 = vadd.f32 %v2351_v42, %v274_v50  ;;  %v361_v57 = vadd.f32 %v2354_v41, %v360_v53 }
 0x1c9   :  { %v456_v58 = vmul.f32 %v366_v49, %v3470_v44  ;;  %v458_v59 = vmul.f32 %v366_v49, %v3475_v45  ;;  %v460_v60 = vmul.f32 %v366_v49, %v3480_v46  ;;  %v462_v61 = vmul.f32 %v366_v49, %v3485_v48 }
 0x1ca   :  { %v471_v62 = vmul.f32 0.35355338, %v275_v54  ;;  %v455_v63 = vmul.f32 %v361_v57, %v3490_v51  ;;  %v457_v0 = vmul.f32 %v361_v57, %v3495_v52  ;;  %v459_v1 = vmul.f32 %v361_v57, %v3500_v55 }
 0x1cb   :  { %v461_v2 = vmul.f32 %v361_v57, %v3505_v56  ;;  %v472_v28 = vmul.f32 0.35355338, %v280_v25  ;;  %v759_v57 = vld [vmem:[%s3918_s12] sm:$0xff] }
 0x1cc   :  { %2672 = vmatprep.mubr.msk.f32.mxu0 %vm201_vm1, %v471_v62  ;;  %v2924_v5 = vpack.c.bf16 %v456_v58, %v455_v63  ;;  %v2930_v6 = vpack.c.bf16 %v458_v59, %v457_v0  ;;  %v2936_v7 = vpack.c.bf16 %v460_v60, %v459_v1  ;;  %v760_v58 = vld [vmem:[%s3918_s12 + $0x8] sm:$0xff]  ;;  %v761_v59 = vld [vmem:[%s3918_s12 + $0x10] sm:$0xff] }
 0x1cd   :  { %v2942_v8 = vpack.c.bf16 %v462_v61, %v461_v2  ;;  %v2980_v60 = vpack.c.bf16 %v760_v58, %v759_v57  ;;  %v762_v61 = vld [vmem:[%s3918_s12 + $0x18] sm:$0xff]  ;;  %v2378_v58 = vld [vmem:[%s3921_s15] ss:$0 sm:$0xff] }
 0x1ce   :  { %v2655_v9 = vpop.f32.mrb[2].mxu1  ;;  %2926 = vmatprep.subr.msk.bf16.mxu0 %vm3517_vm2, %v2924_v5  ;;  %v2984_v62 = vpack.c.bf16 %v762_v61, %v761_v59 }
 0x1cf   :  { %v452_v10 = vadd.f32 %v2655_v9, %v2357_v4  ;;  %v446_v11 = vpop.f32.mrb[3].mxu1  ;;  %2929 = vmatpush3.bf16.xpose.msk.msra.mxu0 %vm3517_vm2, %v2924_v5 }
 0x1d0   :  { %v447_v12 = vadd.f32 %v2357_v4, %v446_v11  ;;  %2932 = vmatprep.subr.msk.bf16.mxu0 %vm3517_vm2, %v2930_v6 }
 0x1d1   :  { %v464_v13 = vmul.f32 %v452_v10, %v3470_v44  ;;  %v466_v14 = vmul.f32 %v452_v10, %v3475_v45  ;;  %v468_v15 = vmul.f32 %v452_v10, %v3480_v46  ;;  %v470_v16 = vmul.f32 %v452_v10, %v3485_v48  ;;  %v2374_v10 = vld [vmem:[%s3919_s13] ss:$0 sm:$0xff] }
 0x1d2   :  { %v463_v17 = vmul.f32 %v447_v12, %v3490_v51  ;;  %v465_v18 = vmul.f32 %v447_v12, %v3495_v52  ;;  %v467_v19 = vmul.f32 %v447_v12, %v3500_v55  ;;  %v469_v20 = vmul.f32 %v447_v12, %v3505_v56 }
 0x1d4   :  { %v2964_v21 = vpack.c.bf16 %v464_v13, %v463_v17  ;;  %v2968_v22 = vpack.c.bf16 %v466_v14, %v465_v18  ;;  %v2972_v23 = vpack.c.bf16 %v468_v15, %v467_v19  ;;  %v2976_v24 = vpack.c.bf16 %v470_v16, %v469_v20 }
 0x1d6   :  { %2965 = vmatprep.subr.bf16.mxu1 %v2964_v21 }
 0x1d7   :  { %2935 = vmatpush3.bf16.xpose.msk.msra.mxu0 %vm3517_vm2, %v2930_v6 }
 0x1d8   :  { %2938 = vmatprep.subr.msk.bf16.mxu0 %vm3517_vm2, %v2936_v7 }
 0x1df   :  { %2941 = vmatpush3.bf16.xpose.msk.msra.mxu0 %vm3517_vm2, %v2936_v7 }
 0x1e0   :  { %2944 = vmatprep.subr.msk.bf16.mxu0 %vm3517_vm2, %v2942_v8 }
 0x1e7   :  { %2947 = vmatpush3.bf16.xpose.msk.msra.mxu0 %vm3517_vm2, %v2942_v8 }
 0x1e8   :  { %2981 = vmatprep.subr.bf16.mxu0 %v2980_v60 }
 0x1ee   :  { %2673 = vmatmul.mubr.msk.f32.vlgmr.msra.gmra.mrb[4].mxu0 %vm201_vm1, %v472_v28 }
 0x1ef   :  { %2983 = vmatpush3.bf16.msra.mxu0 %v2980_v60 }
 0x1f0   :  { %2985 = vmatprep.subr.bf16.mxu0 %v2984_v62 }
 0x1f3   :  { %2987 = vmatpush3.bf16.msra.mxu0 %v2984_v62 }
 0x2c1   :  { %v2674_v30 = vpop.f32.mrb[4].mxu0 }
 0x2c2   :  { %v569_v33 = vpop.f32.mrb[5].mxu0  ;;  %v575_v36 = vadd.f32 %v2674_v30, %v3558_v32 }
 0x2c3   :  { %v570_v35 = vadd.f32 %v569_v33, %v3553_v29  ;;  %v899_v33 = vld [vmem:[%s3924_s18 + $0x8] sm:$0xff] }
 0x2c4   :  { %v582_v39 = vsel %vm578_vm3, %v575_v36, -inf }
 0x2c5   :  { %v579_v38 = vsel %vm578_vm3, %v570_v35, -inf }
 0x2c6   :  { %580 = vmax.xlane.f32.xlu0 %v579_v38  ;;  %v901_v38 = vld [vmem:[%s3924_s18 + $0x18] sm:$0xff] }
 0x2ca   :  { %583 = vmax.xlane.f32.xlu0 %v582_v39 }
 0x353   :  { %v581_v41 = vpop.xlane.xlu0 %580 }
 0x354   :  { %v585_v42 = vsub.f32 %v570_v35, %v581_v41 }
 0x356   :  { %v587_v43 = vmul.f32 1.442695, %v585_v42 }
 0x357   :  { %v584_v47 = vpop.xlane.xlu0 %583 }
 0x358   :  { %3135 = vpow2.f32 %v587_v43  ;;  %v586_v49 = vsub.f32 %v575_v36, %v584_v47  ;;  %v900_v36 = vld [vmem:[%s3924_s18 + $0x10] sm:$0xff] }
 0x359   :  { %v2992_v39 = vpack.c.bf16 %v901_v38, %v900_v36 }
 0x35a   :  { %v589_v50 = vmul.f32 1.442695, %v586_v49 }
 0x35c   :  { %3137 = vpow2.f32 %v589_v50 }
 0x362   :  { %v3136_v53 = vpop.eup %3135 }
 0x363   :  { %2691 = vmatprep.mubr.msk.f32.mxu1 %vm578_vm3, %v3136_v53 }
 0x366   :  { %v3138_v54 = vpop.eup %3137 }
 0x367   :  { %2692 = vmatmul.mubr.msk.f32.vlgmr.msra.gmra.mrb[4].mxu1 %vm578_vm3, %v3138_v54 }
 0x368   :  { %2967 = vmatpush3.bf16.msra.mxu1 %v2964_v21 }
 0x369   :  { %2969 = vmatprep.subr.bf16.mxu1 %v2968_v22 }
 0x36c   :  { %2971 = vmatpush3.bf16.msra.mxu1 %v2968_v22 }
 0x36d   :  { %2973 = vmatprep.subr.bf16.mxu1 %v2972_v23 }
 0x370   :  { %2975 = vmatpush3.bf16.msra.mxu1 %v2972_v23 }
 0x371   :  { %2977 = vmatprep.subr.bf16.mxu1 %v2976_v24 }
 0x374   :  { %2979 = vmatpush3.bf16.msra.mxu1 %v2976_v24 }
 0x43a   :  { %v2693_v63 = vpop.f32.mrb[4].mxu1 }
 0x43b   :  { %v673_v0 = vmax.f32 %v2693_v63, 1e-30  ;;  %v663_v1 = vpop.f32.mrb[5].mxu1 }
 0x43c   :  { %v672_v2 = vmax.f32 %v663_v1, 1e-30  ;;  %v1044_v1 = vld [vmem:[%s3926_s20] sm:$0xff] }
 0x43d   :  { %3139 = vrcp.f32 %v673_v0 }
 0x43e   :  { %3141 = vrcp.f32 %v672_v2  ;;  %v1045_v2 = vld [vmem:[%s3926_s20 + $0x8] sm:$0xff] }
 0x447   :  { %v3140_v4 = vpop.eup %3139 }
 0x448   :  { %v3142_v5 = vpop.eup %3141  ;;  %v677_v7 = vmul.f32 %v3140_v4, %v3138_v54  ;;  %v2377_v54 = vld [vmem:[%s3920_s14] ss:$0 sm:$0xff]  ;;  %v2996_v4 = vpack.c.bf16 %v1045_v2, %v1044_v1 }
 0x449   :  { %v676_v6 = vmul.f32 %v3142_v5, %v3136_v53  ;;  %v1046_v5 = vld [vmem:[%s3926_s20 + $0x10] sm:$0xff] }
 0x44a   :  { %2997 = vmatprep.subr.bf16.mxu0 %v2996_v4 }
 0x44b   :  { %2710 = vmatprep.mubr.msk.f32.mxu1 %vm578_vm3, %v676_v6  ;;  %v1047_v6 = vld [vmem:[%s3926_s20 + $0x18] sm:$0xff] }
 0x44c   :  { %2711 = vmatmul.mubr.msk.f32.vlgmr.msra.gmra.mrb[6].mxu1 %vm578_vm3, %v677_v7  ;;  %v3000_v7 = vpack.c.bf16 %v1047_v6, %v1046_v5 }
 0x51f   :  { %v2712_v8 = vpop.f32.mrb[6].mxu1 }
 0x520   :  { %v750_v9 = vpop.f32.mrb[7].mxu1 }
 0x521   :  { %2721 = vmatprep.mubr.msk.f32.mxu0 %vm201_vm1, %v750_v9  ;;  %v1049_v9 = vld [vmem:[%s3926_s20 + $0x28] sm:$0xff] }
 0x522   :  { %2722 = vmatmul.mubr.msk.f32.vlgmr.msra.gmra.mrb[6].mxu0 %vm201_vm1, %v2712_v8  ;;  %v1048_v8 = vld [vmem:[%s3926_s20 + $0x20] sm:$0xff] }
 0x523   :  { %2999 = vmatpush3.bf16.msra.mxu0 %v2996_v4 }
 0x524   :  { %3001 = vmatprep.subr.bf16.mxu0 %v3000_v7 }
 0x527   :  { %3003 = vmatpush3.bf16.msra.mxu0 %v3000_v7 }
 0x5f5   :  { %v2723_v11 = vpop.f32.mrb[6].mxu0 }
 0x5f6   :  { %v842_v12 = vpop.f32.mrb[7].mxu0  ;;  %v848_v13 = vadd.f32 %v2723_v11, %v2374_v10  ;;  %v1050_v11 = vld [vmem:[%s3926_s20 + $0x30] sm:$0xff] }
 0x5f7   :  { %v843_v14 = vadd.f32 %v2374_v10, %v842_v12  ;;  %v3004_v10 = vpack.c.bf16 %v1049_v9, %v1048_v8  ;;  %v1051_v12 = vld [vmem:[%s3926_s20 + $0x38] sm:$0xff] }
 0x5f8   :  { %v852_v17 = vadd.f32 %v848_v13, %v3407_v27  ;;  %v898_v27 = vld [vmem:[%s3924_s18] sm:$0xff]  ;;  %v3008_v13 = vpack.c.bf16 %v1051_v12, %v1050_v11 }
 0x5f9   :  { %v851_v15 = vadd.f32 %v843_v14, %v3405_v26  ;;  %v2988_v35 = vpack.c.bf16 %v899_v33, %v898_v27  ;;  %3005 = vmatprep.subr.bf16.mxu0 %v3004_v10  ;;  %v2379_v14 = vld [vmem:[%s3925_s19] ss:$0 sm:$0xff] }
 0x5fa   :  { %v858_v18 = vsel %vm201_vm1, %v852_v17, 0.0  ;;  %3007 = vmatpush3.bf16.msra.mxu0 %v3004_v10 }
 0x5fb   :  { %v855_v16 = vsel %vm201_vm1, %v851_v15, 0.0  ;;  %2989 = vmatprep.subr.bf16.mxu1 %v2988_v35  ;;  %3009 = vmatprep.subr.bf16.mxu0 %v3008_v13 }
 0x5fc   :  { %856 = vadd.xlane.f32.xlu1 %v855_v16  ;;  %2991 = vmatpush3.bf16.msra.mxu1 %v2988_v35 }
 0x5fd   :  { %2993 = vmatprep.subr.bf16.mxu1 %v2992_v39 }
 0x5fe   :  { %3011 = vmatpush3.bf16.msra.mxu0 %v3008_v13 }
 0x600   :  { %859 = vadd.xlane.f32.xlu1 %v858_v18  ;;  %2995 = vmatpush3.bf16.msra.mxu1 %v2992_v39 }
 0x689   :  { %v857_v19 = vpop.xlane.xlu1 %856 }
 0x68a   :  { %v862_v20 = vmul.f32 0.03125, %v857_v19 }
 0x68c   :  { %v864_v21 = vsub.f32 %v851_v15, %v862_v20 }
 0x68d   :  { %v860_v22 = vpop.xlane.xlu1 %859 }
 0x68e   :  { %v863_v23 = vmul.f32 0.03125, %v860_v22  ;;  %v866_v24 = vmul.f32 %v864_v21, %v864_v21 }
 0x690   :  { %v865_v25 = vsub.f32 %v852_v17, %v863_v23  ;;  %v868_v28 = vsel %vm201_vm1, %v866_v24, 0.0 }
 0x691   :  { %869 = vadd.xlane.f32.xlu0 %v868_v28 }
 0x692   :  { %v867_v30 = vmul.f32 %v865_v25, %v865_v25 }
 0x694   :  { %v871_v26 = vsel %vm201_vm1, %v867_v30, 0.0 }
 0x695   :  { %872 = vadd.xlane.f32.xlu1 %v871_v26 }
 0x71e   :  { %v870_v41 = vpop.xlane.xlu0 %869 }
 0x71f   :  { %v874_v42 = vmul.f32 0.03125, %v870_v41 }
 0x721   :  { %v876_v43 = vadd.f32 1e-05, %v874_v42 }
 0x722   :  { %v873_v47 = vpop.xlane.xlu1 %872 }
 0x723   :  { %3143 = vrsqrt.f32 %v876_v43  ;;  %v875_v49 = vmul.f32 0.03125, %v873_v47 }
 0x725   :  { %v877_v50 = vadd.f32 1e-05, %v875_v49 }
 0x727   :  { %3145 = vrsqrt.f32 %v877_v50 }
 0x72d   :  { %v3144_v53 = vpop.eup %3143 }
 0x72e   :  { %v880_v57 = vmul.f32 %v3144_v53, %v864_v21 }
 0x730   :  { %v888_v59 = vmul.f32 %v2377_v54, %v880_v57 }
 0x731   :  { %v3146_v60 = vpop.eup %3145 }
 0x732   :  { %v881_v61 = vmul.f32 %v3146_v60, %v865_v25  ;;  %v3609_v62 = vadd.f32 %v2378_v58, %v888_v59 }
 0x734   :  { %v889_v63 = vmul.f32 %v2377_v54, %v881_v61  ;;  %2732 = vmatprep.mubr.msk.f32.mxu1 %vm201_vm1, %v3609_v62 }
 0x736   :  { %v3613_v0 = vadd.f32 %v2378_v58, %v889_v63 }
 0x738   :  { %2733 = vmatmul.mubr.msk.f32.vlgmr.msra.gmra.mrb[8].mxu1 %vm201_vm1, %v3613_v0 }
 0x80b   :  { %v2734_v15 = vpop.f32.mrb[8].mxu1 }
 0x80c   :  { %v987_v16 = vadd.f32 %v2734_v15, %v2379_v14  ;;  %v981_v17 = vpop.f32.mrb[9].mxu1 }
 0x80d   :  { %v982_v18 = vadd.f32 %v2379_v14, %v981_v17 }
 0x80e   :  { %v993_v19 = vmul.f32 0.70710677, %v987_v16 }
 0x80f   :  { %v992_v20 = vmul.f32 0.70710677, %v982_v18 }
 0x810   :  { %v995_v21 = vand.u32 2147483647, %v993_v19  ;;  %vm1035_vm4 = vcmp.ge.f32.partialorder %v993_v19, 0.0 }
 0x811   :  { %v994_v22 = vand.u32 2147483647, %v992_v20  ;;  %vm1034_vm5 = vcmp.ge.f32.partialorder %v992_v20, 0.0 }
 0x812   :  { %v997_v23 = vmul.f32 0.3275911, %v995_v21  ;;  %v1023_v30 = vsub.f32 0.0, %v995_v21 }
 0x813   :  { %v996_v24 = vmul.f32 0.3275911, %v994_v22  ;;  %v1022_v26 = vsub.f32 0.0, %v994_v22 }
 0x814   :  { %v999_v25 = vadd.f32 1.0, %v997_v23  ;;  %v1025_v33 = vmul.f32 %v1023_v30, %v995_v21  ;;  %v990_v21 = vmul.f32 0.5, %v982_v18  ;;  %v991_v23 = vmul.f32 0.5, %v987_v16 }
 0x815   :  { %v998_v28 = vadd.f32 1.0, %v996_v24  ;;  %v1024_v38 = vmul.f32 %v1022_v26, %v994_v22 }
 0x816   :  { %3147 = vrcp.f32 %v999_v25  ;;  %v1028_v42 = vmul.f32 1.442695, %v1025_v33 }
 0x817   :  { %3149 = vrcp.f32 %v998_v28  ;;  %v1026_v49 = vmul.f32 1.442695, %v1024_v38  ;;  %v2382_v28 = vld [vmem:[%s3927_s21] ss:$0 sm:$0xff] }
 0x818   :  { %3151 = vpow2.f32 %v1028_v42 }
 0x819   :  { %3153 = vpow2.f32 %v1026_v49 }
 0x820   :  { %v3148_v27 = vpop.eup %3147 }
 0x821   :  { %v3150_v35 = vpop.eup %3149  ;;  %v1005_v36 = vmul.f32 1.0614054, %v3148_v27 }
 0x822   :  { %v1004_v39 = vmul.f32 1.0614054, %v3150_v35  ;;  %v3152_v5 = vpop.eup %3151 }
 0x823   :  { %v1007_v41 = vadd.f32 -1.4531521, %v1005_v36  ;;  %v3154_v7 = vpop.eup %3153 }
 0x824   :  { %v1006_v43 = vadd.f32 -1.4531521, %v1004_v39 }
 0x825   :  { %v1009_v47 = vmul.f32 %v3148_v27, %v1007_v41 }
 0x826   :  { %v1008_v50 = vmul.f32 %v3150_v35, %v1006_v43 }
 0x827   :  { %v1011_v53 = vadd.f32 1.4214138, %v1009_v47 }
 0x828   :  { %v1010_v54 = vadd.f32 1.4214138, %v1008_v50  ;;  %v2388_v50 = vld [vmem:[%s3959_s2 + $0x28] sm:$0xff] }
 0x829   :  { %v1013_v57 = vmul.f32 %v3148_v27, %v1011_v53 }
 0x82a   :  { %v1012_v58 = vmul.f32 %v3150_v35, %v1010_v54  ;;  %v2403_v54 = vld [vmem:[%s3961_s7 + $0x20] sm:$0xff] }
 0x82b   :  { %v1015_v59 = vadd.f32 -0.28449672, %v1013_v57  ;;  %v2404_v57 = vld [vmem:[%s3961_s7 + $0x28] sm:$0xff] }
 0x82c   :  { %v1014_v60 = vadd.f32 -0.28449672, %v1012_v58  ;;  %v3028_v58 = vpack.c.bf16 %v2404_v57, %v2403_v54 }
 0x82d   :  { %v1017_v61 = vmul.f32 %v3148_v27, %v1015_v59  ;;  %v2389_v59 = vld [vmem:[%s3959_s2 + $0x30] sm:$0xff] }
 0x82e   :  { %v1016_v63 = vmul.f32 %v3150_v35, %v1014_v60  ;;  %v2390_v60 = vld [vmem:[%s3959_s2 + $0x38] sm:$0xff]  ;;  %3029 = vmatprep.subr.bf16.mxu0 %v3028_v58 }
 0x82f   :  { %v1019_v1 = vadd.f32 0.2548296, %v1017_v61  ;;  %v2405_v61 = vld [vmem:[%s3961_s7 + $0x30] sm:$0xff] }
 0x830   :  { %v1018_v2 = vadd.f32 0.2548296, %v1016_v63  ;;  %v3016_v63 = vpack.c.bf16 %v2390_v60, %v2389_v59 }
 0x831   :  { %v1021_v4 = vmul.f32 %v3148_v27, %v1019_v1  ;;  %v2406_v1 = vld [vmem:[%s3961_s7 + $0x38] sm:$0xff] }
 0x832   :  { %v1020_v6 = vmul.f32 %v3150_v35, %v1018_v2  ;;  %v3032_v2 = vpack.c.bf16 %v2406_v1, %v2405_v61 }
 0x833   :  { %v1031_v8 = vmul.f32 %v3152_v5, %v1021_v4  ;;  %v2395_v4 = vld [vmem:[%s3960_s27 + $0x20] sm:$0xff]  ;;  %v2396_v5 = vld [vmem:[%s3960_s27 + $0x28] sm:$0xff] }
 0x834   :  { %v1030_v9 = vmul.f32 %v3154_v7, %v1020_v6  ;;  %v3020_v6 = vpack.c.bf16 %v2396_v5, %v2395_v4 }
 0x835   :  { %v1033_v10 = vsub.f32 1.0, %v1031_v8 }
 0x836   :  { %v1032_v11 = vsub.f32 1.0, %v1030_v9 }
 0x837   :  { %v1037_v12 = vsub.f32 0.0, %v1033_v10 }
 0x838   :  { %v1036_v13 = vsub.f32 0.0, %v1032_v11 }
 0x839   :  { %v1039_v14 = vsel %vm1035_vm4, %v1033_v10, %v1037_v12 }
 0x83a   :  { %v1041_v15 = vadd.f32 1.0, %v1039_v14  ;;  %v1038_v17 = vsel %vm1034_vm5, %v1032_v11, %v1036_v13  ;;  %v2385_v14 = vld [vmem:[%s3922_s16] ss:$0 sm:$0xff] }
 0x83b   :  { %v1040_v22 = vadd.f32 1.0, %v1038_v17 }
 0x83c   :  { %v1043_v25 = vmul.f32 %v1041_v15, %v991_v23 }
 0x83d   :  { %v1042_v24 = vmul.f32 %v1040_v22, %v990_v21  ;;  %v2386_v22 = vld [vmem:[%s3923_s17] ss:$0 sm:$0xff] }
 0x83f   :  { %2751 = vmatprep.mubr.msk.f32.mxu0 %vm578_vm3, %v1042_v24 }
 0x840   :  { %2752 = vmatmul.mubr.msk.f32.vlgmr.msra.gmra.mrb[8].mxu0 %vm578_vm3, %v1043_v25  ;;  %v2397_v25 = vld [vmem:[%s3960_s27 + $0x30] sm:$0xff] }
 0x841   :  { %3031 = vmatpush3.bf16.msra.mxu0 %v3028_v58 }
 0x842   :  { %3033 = vmatprep.subr.bf16.mxu0 %v3032_v2 }
 0x845   :  { %3035 = vmatpush3.bf16.msra.mxu0 %v3032_v2 }
 0x846   :  { %3061 = vmatprep.subr.bf16.mxu0 %v3427_v31 }
 0x913   :  { %v2753_v30 = vpop.f32.mrb[8].mxu0 }
 0x914   :  { %v1137_v19 = vadd.f32 %v2753_v30, %v2382_v28  ;;  %v1131_v26 = vpop.f32.mrb[9].mxu0 }
 0x915   :  { %v1132_v27 = vadd.f32 %v2382_v28, %v1131_v26  ;;  %v2398_v28 = vld [vmem:[%s3960_s27 + $0x38] sm:$0xff] }
 0x916   :  { %v1141_v20 = vadd.f32 %v1137_v19, %v3613_v0  ;;  %v3024_v26 = vpack.c.bf16 %v2398_v28, %v2397_v25  ;;  %v2428_v25 = vld [vmem:[%s3918_s12 + $0x38] sm:$0xff] }
 0x917   :  { %v1140_v18 = vadd.f32 %v1132_v27, %v3609_v62  ;;  %v2387_v62 = vld [vmem:[%s3959_s2 + $0x20] sm:$0xff] }
 0x918   :  { %v1147_v16 = vsel %vm201_vm1, %v1141_v20, 0.0  ;;  %v3012_v53 = vpack.c.bf16 %v2388_v50, %v2387_v62  ;;  %v2392_v27 = vld [vmem:[%s3965_s1 + $0x1] ss:$0 sm:$0xff] }
 0x919   :  { %1148 = vadd.xlane.f32.xlu1 %v1147_v16  ;;  %v1144_v33 = vsel %vm201_vm1, %v1140_v18, 0.0 }
 0x91a   :  { %1145 = vadd.xlane.f32.xlu0 %v1144_v33  ;;  %3013 = vmatprep.subr.bf16.mxu1 %v3012_v53 }
 0x91b   :  { %3015 = vmatpush3.bf16.msra.mxu1 %v3012_v53 }
 0x91c   :  { %3017 = vmatprep.subr.bf16.mxu1 %v3016_v63 }
 0x91f   :  { %3019 = vmatpush3.bf16.msra.mxu1 %v3016_v63 }
 0x920   :  { %3021 = vmatprep.subr.bf16.mxu1 %v3020_v6 }
 0x9a6   :  { %v1149_v35 = vpop.xlane.xlu1 %1148 }
 0x9a7   :  { %v1151_v36 = vmul.f32 0.03125, %v1149_v35  ;;  %v1146_v38 = vpop.xlane.xlu0 %1145 }
 0x9a8   :  { %v1150_v39 = vmul.f32 0.03125, %v1146_v38 }
 0x9a9   :  { %v1153_v41 = vsub.f32 %v1141_v20, %v1151_v36 }
 0x9aa   :  { %v1152_v42 = vsub.f32 %v1140_v18, %v1150_v39 }
 0x9ab   :  { %v1155_v43 = vmul.f32 %v1153_v41, %v1153_v41 }
 0x9ac   :  { %v1154_v47 = vmul.f32 %v1152_v42, %v1152_v42 }
 0x9ad   :  { %v1159_v49 = vsel %vm201_vm1, %v1155_v43, 0.0 }
 0x9ae   :  { %1160 = vadd.xlane.f32.xlu1 %v1159_v49  ;;  %v1156_v0 = vsel %vm201_vm1, %v1154_v47, 0.0 }
 0x9af   :  { %1157 = vadd.xlane.f32.xlu0 %v1156_v0  ;;  %v2400_v0 = vld [vmem:[%s3964_s10 + $0x1] ss:$0 sm:$0xff] }
 0xa3b   :  { %v1161_v7 = vpop.xlane.xlu1 %1160 }
 0xa3c   :  { %v1163_v8 = vmul.f32 0.03125, %v1161_v7  ;;  %v1158_v9 = vpop.xlane.xlu0 %1157 }
 0xa3d   :  { %v1162_v10 = vmul.f32 0.03125, %v1158_v9 }
 0xa3e   :  { %v1165_v11 = vadd.f32 1e-05, %v1163_v8 }
 0xa3f   :  { %v1164_v12 = vadd.f32 1e-05, %v1162_v10 }
 0xa40   :  { %3155 = vrsqrt.f32 %v1165_v11 }
 0xa41   :  { %3157 = vrsqrt.f32 %v1164_v12 }
 0xa4a   :  { %v3156_v13 = vpop.eup %3155 }
 0xa4b   :  { %v3158_v15 = vpop.eup %3157  ;;  %v1169_v17 = vmul.f32 %v3156_v13, %v1153_v41 }
 0xa4c   :  { %v1168_v21 = vmul.f32 %v3158_v15, %v1152_v42 }
 0xa4d   :  { %v1177_v23 = vmul.f32 %v2385_v14, %v1169_v17 }
 0xa4e   :  { %v1176_v24 = vmul.f32 %v2385_v14, %v1168_v21 }
 0xa4f   :  { %v3700_v19 = vadd.f32 %v2386_v22, %v1177_v23  ;;  %v2427_v23 = vld [vmem:[%s3918_s12 + $0x30] sm:$0xff] }
 0xa50   :  { %v3698_v30 = vadd.f32 %v2386_v22, %v1176_v24  ;;  %v3096_v28 = vpack.c.bf16 %v2428_v25, %v2427_v23  ;;  %v2451_v23 = vld [vmem:[%s3926_s20 + $0x70] sm:$0xff] }
 0xa52   :  { %2762 = vmatprep.mubr.msk.f32.mxu1 %vm201_vm1, %v3698_v30  ;;  %2784 = vmatprep.mubr.msk.f32.mxu0 %vm201_vm1, %v3698_v30 }
 0xa53   :  { %2763 = vmatmul.mubr.msk.f32.vlgmr.msra.gmra.mrb[10].mxu1 %vm201_vm1, %v3700_v19  ;;  %2785 = vmatmul.mubr.msk.f32.vlgmr.msra.gmra.mrb[10].mxu0 %vm201_vm1, %v3700_v19 }
 0xa54   :  { %3023 = vmatpush3.bf16.msra.mxu1 %v3020_v6  ;;  %2773 = vmatprep.mubr.msk.f32.mxu1 %vm201_vm1, %v3698_v30 }
 0xa55   :  { %3025 = vmatprep.subr.bf16.mxu1 %v3024_v26  ;;  %3063 = vmatpush3.bf16.msra.mxu0 %v3427_v31  ;;  %v2408_v31 = vld [vmem:[%s3917_s11 + $0x1] ss:$0 sm:$0xff] }
 0xa56   :  { %3065 = vmatprep.subr.bf16.mxu0 %v3437_v34 }
 0xa58   :  { %3027 = vmatpush3.bf16.msra.mxu1 %v3024_v26 }
 0xa59   :  { %3067 = vmatpush3.bf16.msra.mxu0 %v3437_v34 }
 0xa5a   :  { %3069 = vmatprep.subr.bf16.mxu0 %v3445_v37 }
 0xa5b   :  { %2774 = vmatmul.mubr.msk.f32.vlgmr.msra.gmra.mrb[12].mxu1 %vm201_vm1, %v3700_v19 }
 0xa5d   :  { %3071 = vmatpush3.bf16.msra.mxu0 %v3445_v37 }
 0xa5e   :  { %3073 = vmatprep.subr.bf16.mxu0 %v3456_v40 }
 0xa61   :  { %3075 = vmatpush3.bf16.msra.mxu0 %v3456_v40 }
 0xb26   :  { %v2764_v34 = vpop.f32.mrb[10].mxu1  ;;  %v2786_v20 = vpop.f32.mrb[10].mxu0 }
 0xb27   :  { %v1453_v18 = vadd.f32 %v2786_v20, %v2408_v31  ;;  %v1271_v16 = vpop.f32.mrb[11].mxu1  ;;  %v1447_v33 = vpop.f32.mrb[11].mxu0 }
 0xb28   :  { %v1272_v35 = vadd.f32 %v2392_v27, %v1271_v16  ;;  %v1448_v36 = vadd.f32 %v2408_v31, %v1447_v33 }
 0xb29   :  { %v1465_v37 = vmul.f32 %v1453_v18, %v3470_v44  ;;  %v1467_v38 = vmul.f32 %v1453_v18, %v3475_v45  ;;  %v1469_v40 = vmul.f32 %v1453_v18, %v3480_v46  ;;  %v1471_v49 = vmul.f32 %v1453_v18, %v3485_v48 }
 0xb2a   :  { %v1472_v39 = vmul.f32 0.35355338, %v1272_v35  ;;  %v1464_v41 = vmul.f32 %v1448_v36, %v3490_v51  ;;  %v1466_v42 = vmul.f32 %v1448_v36, %v3495_v52  ;;  %v1468_v43 = vmul.f32 %v1448_v36, %v3500_v55 }
 0xb2b   :  { %v1470_v47 = vmul.f32 %v1448_v36, %v3505_v56 }
 0xb2c   :  { %2803 = vmatprep.mubr.msk.f32.mxu1 %vm201_vm1, %v1472_v39  ;;  %v3076_v62 = vpack.c.bf16 %v1465_v37, %v1464_v41  ;;  %v3080_v50 = vpack.c.bf16 %v1467_v38, %v1466_v42  ;;  %v3084_v53 = vpack.c.bf16 %v1469_v40, %v1468_v43  ;;  %v2430_v37 = vld [vmem:[%s3919_s13 + $0x1] ss:$0 sm:$0xff] }
 0xb2d   :  { %v3088_v54 = vpack.c.bf16 %v1471_v49, %v1470_v47 }
 0xb2e   :  { %v2775_v57 = vpop.f32.mrb[12].mxu1  ;;  %3077 = vmatprep.subr.bf16.mxu0 %v3076_v62 }
 0xb2f   :  { %v1365_v58 = vadd.f32 %v2775_v57, %v2400_v0  ;;  %v1359_v59 = vpop.f32.mrb[13].mxu1 }
 0xb30   :  { %v1360_v60 = vadd.f32 %v2400_v0, %v1359_v59 }
 0xb31   :  { %v1457_v61 = vmul.f32 %v1365_v58, %v3470_v44  ;;  %v1459_v63 = vmul.f32 %v1365_v58, %v3475_v45  ;;  %v1461_v1 = vmul.f32 %v1365_v58, %v3480_v46  ;;  %v1463_v2 = vmul.f32 %v1365_v58, %v3485_v48 }
 0xb32   :  { %v1456_v4 = vmul.f32 %v1360_v60, %v3490_v51  ;;  %v1458_v5 = vmul.f32 %v1360_v60, %v3495_v52  ;;  %v1460_v6 = vmul.f32 %v1360_v60, %v3500_v55  ;;  %v1462_v7 = vmul.f32 %v1360_v60, %v3505_v56 }
 0xb33   :  { %v1277_v44 = vadd.f32 %v2764_v34, %v2392_v27 }
 0xb34   :  { %v3036_v8 = vpack.c.bf16 %v1457_v61, %v1456_v4  ;;  %v3042_v9 = vpack.c.bf16 %v1459_v63, %v1458_v5  ;;  %v3048_v10 = vpack.c.bf16 %v1461_v1, %v1460_v6  ;;  %v3054_v11 = vpack.c.bf16 %v1463_v2, %v1462_v7  ;;  %v2438_v61 = vld [vmem:[%s3924_s18 + $0x28] sm:$0xff]  ;;  %v2439_v1 = vld [vmem:[%s3924_s18 + $0x30] sm:$0xff]  ;;  %v2440_v2 = vld [vmem:[%s3924_s18 + $0x38] sm:$0xff] }
 0xb35   :  { %v1473_v45 = vmul.f32 0.35355338, %v1277_v44  ;;  %v3104_v4 = vpack.c.bf16 %v2440_v2, %v2439_v1  ;;  %v2435_v44 = vld [vmem:[%s3920_s14 + $0x1] ss:$0 sm:$0xff] }
 0xb36   :  { %3038 = vmatprep.subr.msk.bf16.mxu1 %vm3517_vm2, %v3036_v8 }
 0xb37   :  { %3041 = vmatpush3.bf16.xpose.msk.msra.mxu1 %vm3517_vm2, %v3036_v8 }
 0xb38   :  { %3044 = vmatprep.subr.msk.bf16.mxu1 %vm3517_vm2, %v3042_v9 }
 0xb3f   :  { %3047 = vmatpush3.bf16.xpose.msk.msra.mxu1 %vm3517_vm2, %v3042_v9 }
 0xb40   :  { %3050 = vmatprep.subr.msk.bf16.mxu1 %vm3517_vm2, %v3048_v10 }
 0xb47   :  { %3053 = vmatpush3.bf16.xpose.msk.msra.mxu1 %vm3517_vm2, %v3048_v10 }
 0xb48   :  { %3056 = vmatprep.subr.msk.bf16.mxu1 %vm3517_vm2, %v3054_v11 }
 0xb4f   :  { %3059 = vmatpush3.bf16.xpose.msk.msra.mxu1 %vm3517_vm2, %v3054_v11 }
 0xb56   :  { %2804 = vmatmul.mubr.msk.f32.vlgmr.msra.gmra.mrb[14].mxu1 %vm201_vm1, %v1473_v45 }
 0xc29   :  { %v2805_v46 = vpop.f32.mrb[14].mxu1 }
 0xc2a   :  { %v1576_v48 = vadd.f32 %v2805_v46, %v3558_v32  ;;  %v1570_v51 = vpop.f32.mrb[15].mxu1  ;;  %v2426_v32 = vld [vmem:[%s3918_s12 + $0x28] sm:$0xff] }
 0xc2b   :  { %v1571_v52 = vadd.f32 %v1570_v51, %v3553_v29  ;;  %v2425_v29 = vld [vmem:[%s3918_s12 + $0x20] sm:$0xff] }
 0xc2c   :  { %v1582_v55 = vsel %vm578_vm3, %v1576_v48, -inf  ;;  %v3092_v24 = vpack.c.bf16 %v2426_v32, %v2425_v29  ;;  %v2436_v51 = vld [vmem:[%s3921_s15 + $0x1] ss:$0 sm:$0xff]  ;;  %v2450_v29 = vld [vmem:[%s3926_s20 + $0x68] sm:$0xff] }
 0xc2d   :  { %1583 = vmax.xlane.f32.xlu1 %v1582_v55  ;;  %v1579_v56 = vsel %vm578_vm3, %v1571_v52, -inf }
 0xc2e   :  { %1580 = vmax.xlane.f32.xlu0 %v1579_v56  ;;  %3093 = vmatprep.subr.bf16.mxu1 %v3092_v24 }
 0xc2f   :  { %3095 = vmatpush3.bf16.msra.mxu1 %v3092_v24  ;;  %v2452_v24 = vld [vmem:[%s3926_s20 + $0x78] sm:$0xff] }
 0xc30   :  { %3097 = vmatprep.subr.bf16.mxu1 %v3096_v28  ;;  %v3120_v25 = vpack.c.bf16 %v2452_v24, %v2451_v23 }
 0xc33   :  { %3099 = vmatpush3.bf16.msra.mxu1 %v3096_v28  ;;  %v2442_v28 = vld [vmem:[%s3925_s19 + $0x1] ss:$0 sm:$0xff] }
 0xcba   :  { %v1584_v12 = vpop.xlane.xlu1 %1583 }
 0xcbb   :  { %v1586_v13 = vsub.f32 %v1576_v48, %v1584_v12  ;;  %v1581_v3 = vpop.xlane.xlu0 %1580 }
 0xcbc   :  { %v1585_v14 = vsub.f32 %v1571_v52, %v1581_v3  ;;  %v2446_v3 = vld [vmem:[%s3926_s20 + $0x48] sm:$0xff] }
 0xcbd   :  { %v1589_v15 = vmul.f32 1.442695, %v1586_v13  ;;  %v2445_v13 = vld [vmem:[%s3926_s20 + $0x40] sm:$0xff] }
 0xcbe   :  { %v1587_v17 = vmul.f32 1.442695, %v1585_v14  ;;  %v3108_v14 = vpack.c.bf16 %v2446_v3, %v2445_v13 }
 0xcc0   :  { %3159 = vpow2.f32 %v1587_v17  ;;  %3109 = vmatprep.subr.bf16.mxu1 %v3108_v14  ;;  %v2448_v17 = vld [vmem:[%s3926_s20 + $0x58] sm:$0xff] }
 0xcc1   :  { %3161 = vpow2.f32 %v1589_v15  ;;  %v2447_v15 = vld [vmem:[%s3926_s20 + $0x50] sm:$0xff] }
 0xcca   :  { %v3160_v21 = vpop.eup %3159 }
 0xccb   :  { %v3162_v22 = vpop.eup %3161  ;;  %2822 = vmatprep.mubr.msk.f32.mxu0 %vm578_vm3, %v3160_v21 }
 0xccc   :  { %2823 = vmatmul.mubr.msk.f32.vlgmr.msra.gmra.mrb[12].mxu0 %vm578_vm3, %v3162_v22 }
 0xccd   :  { %3079 = vmatpush3.bf16.msra.mxu0 %v3076_v62 }
 0xcce   :  { %3081 = vmatprep.subr.bf16.mxu0 %v3080_v50 }
 0xcd1   :  { %3083 = vmatpush3.bf16.msra.mxu0 %v3080_v50 }
 0xcd2   :  { %3085 = vmatprep.subr.bf16.mxu0 %v3084_v53 }
 0xcd5   :  { %3087 = vmatpush3.bf16.msra.mxu0 %v3084_v53 }
 0xcd6   :  { %3089 = vmatprep.subr.bf16.mxu0 %v3088_v54 }
 0xcd9   :  { %3091 = vmatpush3.bf16.msra.mxu0 %v3088_v54 }
 0xd9f   :  { %v2824_v26 = vpop.f32.mrb[12].mxu0 }
 0xda0   :  { %v1673_v31 = vmax.f32 %v2824_v26, 1e-30  ;;  %v1663_v27 = vpop.f32.mrb[13].mxu0 }
 0xda1   :  { %v1672_v34 = vmax.f32 %v1663_v27, 1e-30 }
 0xda2   :  { %3163 = vrcp.f32 %v1673_v31 }
 0xda3   :  { %3165 = vrcp.f32 %v1672_v34 }
 0xdac   :  { %v3164_v20 = vpop.eup %3163 }
 0xdad   :  { %v3166_v18 = vpop.eup %3165  ;;  %v1677_v33 = vmul.f32 %v3164_v20, %v3162_v22  ;;  %v2449_v22 = vld [vmem:[%s3926_s20 + $0x60] sm:$0xff] }
 0xdae   :  { %v1676_v16 = vmul.f32 %v3166_v18, %v3160_v21  ;;  %v3112_v21 = vpack.c.bf16 %v2448_v17, %v2447_v15  ;;  %v3116_v32 = vpack.c.bf16 %v2450_v29, %v2449_v22 }
 0xdb0   :  { %2841 = vmatprep.mubr.msk.f32.mxu0 %vm578_vm3, %v1676_v16 }
 0xdb1   :  { %2842 = vmatmul.mubr.msk.f32.vlgmr.msra.gmra.mrb[14].mxu0 %vm578_vm3, %v1677_v33 }
 0xe84   :  { %v2843_v35 = vpop.f32.mrb[14].mxu0 }
 0xe85   :  { %v1750_v36 = vpop.f32.mrb[15].mxu0 }
 0xe86   :  { %2852 = vmatprep.mubr.msk.f32.mxu1 %vm201_vm1, %v1750_v36 }
 0xe87   :  { %2853 = vmatmul.mubr.msk.f32.vlgmr.msra.gmra.mrb[16].mxu1 %vm201_vm1, %v2843_v35 }
 0xe88   :  { %3111 = vmatpush3.bf16.msra.mxu1 %v3108_v14 }
 0xe89   :  { %3113 = vmatprep.subr.bf16.mxu1 %v3112_v21 }
 0xe8c   :  { %3115 = vmatpush3.bf16.msra.mxu1 %v3112_v21  ;;  %v2454_v21 = vld [vmem:[%s3927_s21 + $0x1] ss:$0 sm:$0xff] }
 0xe8d   :  { %3117 = vmatprep.subr.bf16.mxu1 %v3116_v32 }
 0xe90   :  { %3119 = vmatpush3.bf16.msra.mxu1 %v3116_v32 }
 0xe91   :  { %3121 = vmatprep.subr.bf16.mxu1 %v3120_v25 }
 0xe94   :  { %3123 = vmatpush3.bf16.msra.mxu1 %v3120_v25 }
 0xf5a   :  { %v2854_v38 = vpop.f32.mrb[16].mxu1 }
 0xf5b   :  { %v1850_v40 = vadd.f32 %v2854_v38, %v2430_v37  ;;  %v1844_v39 = vpop.f32.mrb[17].mxu1 }
 0xf5c   :  { %v1845_v41 = vadd.f32 %v2430_v37, %v1844_v39 }
 0xf5d   :  { %v1854_v42 = vadd.f32 %v1850_v40, %v3700_v19 }
 0xf5e   :  { %v1853_v43 = vadd.f32 %v1845_v41, %v3698_v30  ;;  %v2437_v30 = vld [vmem:[%s3924_s18 + $0x20] sm:$0xff] }
 0xf5f   :  { %v1862_v47 = vsel %vm201_vm1, %v1854_v42, 0.0  ;;  %v3100_v63 = vpack.c.bf16 %v2438_v61, %v2437_v30 }
 0xf60   :  { %1863 = vadd.xlane.f32.xlu1 %v1862_v47  ;;  %v1859_v49 = vsel %vm201_vm1, %v1853_v43, 0.0 }
 0xf61   :  { %1860 = vadd.xlane.f32.xlu0 %v1859_v49  ;;  %3101 = vmatprep.subr.bf16.mxu0 %v3100_v63 }
 0xf62   :  { %3103 = vmatpush3.bf16.msra.mxu0 %v3100_v63 }
 0xf63   :  { %3105 = vmatprep.subr.bf16.mxu0 %v3104_v4 }
 0xf66   :  { %3107 = vmatpush3.bf16.msra.mxu0 %v3104_v4 }
 0xfed   :  { %v1864_v0 = vpop.xlane.xlu1 %1863 }
 0xfee   :  { %v1866_v62 = vmul.f32 0.03125, %v1864_v0  ;;  %v1861_v50 = vpop.xlane.xlu0 %1860 }
 0xfef   :  { %v1865_v53 = vmul.f32 0.03125, %v1861_v50 }
 0xff0   :  { %v1868_v54 = vsub.f32 %v1854_v42, %v1866_v62 }
 0xff1   :  { %v1867_v57 = vsub.f32 %v1853_v43, %v1865_v53 }
 0xff2   :  { %v1870_v58 = vmul.f32 %v1868_v54, %v1868_v54 }
 0xff3   :  { %v1869_v59 = vmul.f32 %v1867_v57, %v1867_v57 }
 0xff4   :  { %v1874_v60 = vsel %vm201_vm1, %v1870_v58, 0.0 }
 0xff5   :  { %1875 = vadd.xlane.f32.xlu1 %v1874_v60  ;;  %v1871_v19 = vsel %vm201_vm1, %v1869_v59, 0.0 }
 0xff6   :  { %1872 = vadd.xlane.f32.xlu0 %v1871_v19 }
0x1082   :  { %v1876_v5 = vpop.xlane.xlu1 %1875 }
0x1083   :  { %v1878_v6 = vmul.f32 0.03125, %v1876_v5  ;;  %v1873_v7 = vpop.xlane.xlu0 %1872 }
0x1084   :  { %v1877_v8 = vmul.f32 0.03125, %v1873_v7 }
0x1085   :  { %v1880_v9 = vadd.f32 1e-05, %v1878_v6 }
0x1086   :  { %v1879_v10 = vadd.f32 1e-05, %v1877_v8 }
0x1087   :  { %3167 = vrsqrt.f32 %v1880_v9 }
0x1088   :  { %3169 = vrsqrt.f32 %v1879_v10 }
0x1091   :  { %v3168_v11 = vpop.eup %3167 }
0x1092   :  { %v3170_v45 = vpop.eup %3169  ;;  %v1884_v46 = vmul.f32 %v3168_v11, %v1868_v54 }
0x1093   :  { %v1883_v48 = vmul.f32 %v3170_v45, %v1867_v57 }
0x1094   :  { %v1892_v52 = vmul.f32 %v2435_v44, %v1884_v46 }
0x1095   :  { %v1891_v55 = vmul.f32 %v2435_v44, %v1883_v48 }
0x1096   :  { %v3815_v12 = vadd.f32 %v2436_v51, %v1892_v52 }
0x1097   :  { %v3813_v56 = vadd.f32 %v2436_v51, %v1891_v55 }
0x1099   :  { %2863 = vmatprep.mubr.msk.f32.mxu0 %vm201_vm1, %v3813_v56 }
0x109a   :  { %2864 = vmatmul.mubr.msk.f32.vlgmr.msra.gmra.mrb[16].mxu0 %vm201_vm1, %v3815_v12 }
0x116d   :  { %v2865_v26 = vpop.f32.mrb[16].mxu0 }
0x116e   :  { %v1992_v31 = vadd.f32 %v2865_v26, %v2442_v28  ;;  %v1986_v27 = vpop.f32.mrb[17].mxu0 }
0x116f   :  { %v1987_v34 = vadd.f32 %v2442_v28, %v1986_v27 }
0x1170   :  { %v1998_v20 = vmul.f32 0.70710677, %v1992_v31  ;;  %v1996_v14 = vmul.f32 0.5, %v1992_v31 }
0x1171   :  { %v1997_v18 = vmul.f32 0.70710677, %v1987_v34  ;;  %v1995_v13 = vmul.f32 0.5, %v1987_v34 }
0x1172   :  { %v2000_v16 = vand.u32 2147483647, %v1998_v20  ;;  %vm2040_vm6 = vcmp.ge.f32.partialorder %v1998_v20, 0.0 }
0x1173   :  { %v1999_v33 = vand.u32 2147483647, %v1997_v18  ;;  %vm2039_vm7 = vcmp.ge.f32.partialorder %v1997_v18, 0.0 }
0x1174   :  { %v2002_v35 = vmul.f32 0.3275911, %v2000_v16  ;;  %v2028_v40 = vsub.f32 0.0, %v2000_v16 }
0x1175   :  { %v2001_v36 = vmul.f32 0.3275911, %v1999_v33  ;;  %v2027_v39 = vsub.f32 0.0, %v1999_v33 }
0x1176   :  { %v2004_v37 = vadd.f32 1.0, %v2002_v35  ;;  %v2030_v42 = vmul.f32 %v2028_v40, %v2000_v16 }
0x1177   :  { %v2003_v38 = vadd.f32 1.0, %v2001_v36  ;;  %v2029_v49 = vmul.f32 %v2027_v39, %v1999_v33 }
0x1178   :  { %3171 = vrcp.f32 %v2004_v37  ;;  %v2033_v50 = vmul.f32 1.442695, %v2030_v42 }
0x1179   :  { %3173 = vrcp.f32 %v2003_v38  ;;  %v2031_v57 = vmul.f32 1.442695, %v2029_v49 }
0x117a   :  { %3175 = vpow2.f32 %v2033_v50 }
0x117b   :  { %3177 = vpow2.f32 %v2031_v57 }
0x1182   :  { %v3172_v41 = vpop.eup %3171 }
0x1183   :  { %v3174_v43 = vpop.eup %3173  ;;  %v2010_v47 = vmul.f32 1.0614054, %v3172_v41 }
0x1184   :  { %v2009_v0 = vmul.f32 1.0614054, %v3174_v43  ;;  %v3176_v7 = vpop.eup %3175 }
0x1185   :  { %v2012_v62 = vadd.f32 -1.4531521, %v2010_v47  ;;  %v3178_v9 = vpop.eup %3177 }
0x1186   :  { %v2011_v53 = vadd.f32 -1.4531521, %v2009_v0  ;;  %v2460_v0 = vld [vmem:[%s3923_s17 + $0x1] ss:$0 sm:$0xff] }
0x1187   :  { %v2014_v54 = vmul.f32 %v3172_v41, %v2012_v62 }
0x1188   :  { %v2013_v58 = vmul.f32 %v3174_v43, %v2011_v53 }
0x1189   :  { %v2016_v59 = vadd.f32 1.4214138, %v2014_v54 }
0x118a   :  { %v2015_v60 = vadd.f32 1.4214138, %v2013_v58 }
0x118b   :  { %v2018_v19 = vmul.f32 %v3172_v41, %v2016_v59 }
0x118c   :  { %v2017_v30 = vmul.f32 %v3174_v43, %v2015_v60 }
0x118d   :  { %v2020_v61 = vadd.f32 -0.28449672, %v2018_v19 }
0x118e   :  { %v2019_v63 = vadd.f32 -0.28449672, %v2017_v30 }
0x118f   :  { %v2022_v1 = vmul.f32 %v3172_v41, %v2020_v61 }
0x1190   :  { %v2021_v2 = vmul.f32 %v3174_v43, %v2019_v63 }
0x1191   :  { %v2024_v4 = vadd.f32 0.2548296, %v2022_v1 }
0x1192   :  { %v2023_v5 = vadd.f32 0.2548296, %v2021_v2 }
0x1193   :  { %v2026_v6 = vmul.f32 %v3172_v41, %v2024_v4 }
0x1194   :  { %v2025_v8 = vmul.f32 %v3174_v43, %v2023_v5  ;;  %v2459_v43 = vld [vmem:[%s3922_s16 + $0x1] ss:$0 sm:$0xff] }
0x1195   :  { %v2036_v10 = vmul.f32 %v3176_v7, %v2026_v6  ;;  %v2239_v7 = vld [vmem:[%s3930_s24] sm:$0xff] }
0x1196   :  { %v2035_v11 = vmul.f32 %v3178_v9, %v2025_v8  ;;  %v2240_v8 = vld [vmem:[%s3930_s24 + $0x8] sm:$0xff] }
0x1197   :  { %v2038_v44 = vsub.f32 1.0, %v2036_v10  ;;  %v3124_v9 = vpack.c.bf16 %v2240_v8, %v2239_v7  ;;  %v2241_v10 = vld [vmem:[%s3930_s24 + $0x10] sm:$0xff] }
0x1198   :  { %v2037_v45 = vsub.f32 1.0, %v2035_v11  ;;  %v2242_v11 = vld [vmem:[%s3930_s24 + $0x18] sm:$0xff] }
0x1199   :  { %v2042_v46 = vsub.f32 0.0, %v2038_v44  ;;  %3125 = vmatprep.subr.bf16.mxu0 %v3124_v9 }
0x119a   :  { %v2041_v48 = vsub.f32 0.0, %v2037_v45  ;;  %3127 = vmatpush3.bf16.msra.mxu0 %v3124_v9 }
0x119b   :  { %v2044_v51 = vsel %vm2040_vm6, %v2038_v44, %v2042_v46  ;;  %v3128_v44 = vpack.c.bf16 %v2242_v11, %v2241_v10 }
0x119c   :  { %v2046_v52 = vadd.f32 1.0, %v2044_v51  ;;  %v2043_v55 = vsel %vm2039_vm7, %v2037_v45, %v2041_v48 }
0x119d   :  { %v2045_v3 = vadd.f32 1.0, %v2043_v55  ;;  %3129 = vmatprep.subr.bf16.mxu0 %v3128_v44 }
0x119e   :  { %v2048_v17 = vmul.f32 %v2046_v52, %v1996_v14  ;;  %3131 = vmatpush3.bf16.msra.mxu0 %v3128_v44 }
0x119f   :  { %v2047_v15 = vmul.f32 %v2045_v3, %v1995_v13  ;;  %v2461_v3 = vld [vmem:[%s3928_s22] ss:$0 sm:$0xff]  ;;  %s3211_s22 = smov [#allocation2]  }
0x11a0   :  { %s2338_s13 = sshll.u32 %s3211_s22, 4  ;;  %s2339_s13 = int_to_ptr.vmem [resolvable:$true] %s2338_s13 }
0x11a1   :  { %2882 = vmatprep.mubr.msk.f32.mxu1 %vm578_vm3, %v2047_v15  ;;  %p3192_p1 = scmp.lt.s32.totalorder %s2339_s13, %s2339_s13 }
0x11a2   :  { %2883 = vmatmul.mubr.msk.f32.vlgmr.msra.gmra.mrb[18].mxu1 %vm578_vm3, %v2048_v17 }
0x1275   :  { %v2884_v22 = vpop.f32.mrb[18].mxu1 }
0x1276   :  { %v2144_v29 = vadd.f32 %v2884_v22, %v2454_v21  ;;  %v2138_v32 = vpop.f32.mrb[19].mxu1 }
0x1277   :  { %v2139_v23 = vadd.f32 %v2454_v21, %v2138_v32  ;;  %v2462_v21 = vld [vmem:[%s3929_s23] ss:$0 sm:$0xff]  ;;  %s3187_s23 = scalar_lea.vmem %s2339_s13, 256 }
0x1278   :  { %v2148_v24 = vadd.f32 %v2144_v29, %v3815_v12  ;;  %p3188_p0 = scmp.ne.s32.totalorder %s2339_s13, %s3187_s23  ;;  %p3193_p2 = scmp.lt.s32.totalorder %s3187_s23, %s3187_s23 }
0x1279   :  { %v2147_v25 = vadd.f32 %v2139_v23, %v3813_v56 }
0x127a   :  { %v2156_v28 = vsel %vm201_vm1, %v2148_v24, 0.0  ;;  %p3194_p3 = por %p3193_p2, %p3192_p1 }
0x127b   :  { %2157 = vadd.xlane.f32.xlu1 %v2156_v28  ;;  %v2153_v26 = vsel %vm201_vm1, %v2147_v25, 0.0 }
0x127c   :  { %2154 = vadd.xlane.f32.xlu0 %v2153_v26  ;;  %p3195_p4 = pnand %p3194_p3, %p3188_p0 }
0x1308   :  { %v2158_v31 = vpop.xlane.xlu1 %2157 }
0x1309   :  { %v2160_v27 = vmul.f32 0.03125, %v2158_v31  ;;  %v2155_v34 = vpop.xlane.xlu0 %2154 }
0x130a   :  { %v2159_v20 = vmul.f32 0.03125, %v2155_v34 }
0x130b   :  { %v2162_v18 = vsub.f32 %v2148_v24, %v2160_v27  ;;  %v2463_v24 = vld [vmem:[%s3931_s25] ss:$0 sm:$0xff] }
0x130c   :  { %v2161_v16 = vsub.f32 %v2147_v25, %v2159_v20 }
0x130d   :  { %v2164_v33 = vmul.f32 %v2162_v18, %v2162_v18 }
0x130e   :  { %v2163_v35 = vmul.f32 %v2161_v16, %v2161_v16 }
0x130f   :  { %v2168_v36 = vsel %vm201_vm1, %v2164_v33, 0.0 }
0x1310   :  { %2169 = vadd.xlane.f32.xlu1 %v2168_v36  ;;  %v2165_v12 = vsel %vm201_vm1, %v2163_v35, 0.0 }
0x1311   :  { %2166 = vadd.xlane.f32.xlu0 %v2165_v12 }
0x139d   :  { %v2170_v56 = vpop.xlane.xlu1 %2169 }
0x139e   :  { %v2172_v37 = vmul.f32 0.03125, %v2170_v56  ;;  %v2167_v38 = vpop.xlane.xlu0 %2166 }
0x139f   :  { %v2171_v40 = vmul.f32 0.03125, %v2167_v38 }
0x13a0   :  { %v2174_v39 = vadd.f32 1e-05, %v2172_v37 }
0x13a1   :  { %v2173_v41 = vadd.f32 1e-05, %v2171_v40 }
0x13a2   :  { %3179 = vrsqrt.f32 %v2174_v39 }
0x13a3   :  { %3181 = vrsqrt.f32 %v2173_v41 }
0x13ac   :  { %v3180_v42 = vpop.eup %3179 }
0x13ad   :  { %v3182_v47 = vpop.eup %3181  ;;  %v2178_v49 = vmul.f32 %v3180_v42, %v2162_v18 }
0x13ae   :  { %v2177_v62 = vmul.f32 %v3182_v47, %v2161_v16 }
0x13af   :  { %v2186_v50 = vmul.f32 %v2459_v43, %v2178_v49 }
0x13b0   :  { %v2185_v53 = vmul.f32 %v2459_v43, %v2177_v62 }
0x13b1   :  { %v2194_v54 = vadd.f32 %v2460_v0, %v2186_v50 }
0x13b2   :  { %v2193_v57 = vadd.f32 %v2460_v0, %v2185_v53 }
0x13b3   :  { %v2200_v58 = vsel %vm201_vm1, %v2194_v54, 0.0 }
0x13b4   :  { %2201 = vadd.xlane.f32.xlu1 %v2200_v58  ;;  %v2197_v59 = vsel %vm201_vm1, %v2193_v57, 0.0 }
0x13b5   :  { %2198 = vadd.xlane.f32.xlu0 %v2197_v59 }
0x1441   :  { %v2202_v60 = vpop.xlane.xlu1 %2201 }
0x1442   :  { %v2204_v19 = vmul.f32 0.03125, %v2202_v60  ;;  %v2199_v30 = vpop.xlane.xlu0 %2198 }
0x1443   :  { %v2203_v61 = vmul.f32 0.03125, %v2199_v30 }
0x1444   :  { %v2206_v63 = vsub.f32 %v2194_v54, %v2204_v19 }
0x1445   :  { %v2205_v1 = vsub.f32 %v2193_v57, %v2203_v61 }
0x1446   :  { %v2208_v2 = vmul.f32 %v2206_v63, %v2206_v63 }
0x1447   :  { %v2207_v4 = vmul.f32 %v2205_v1, %v2205_v1 }
0x1448   :  { %v2212_v5 = vsel %vm201_vm1, %v2208_v2, 0.0 }
0x1449   :  { %2213 = vadd.xlane.f32.xlu1 %v2212_v5  ;;  %v2209_v6 = vsel %vm201_vm1, %v2207_v4, 0.0 }
0x144a   :  { %2210 = vadd.xlane.f32.xlu0 %v2209_v6 }
0x14d6   :  { %v2214_v45 = vpop.xlane.xlu1 %2213 }
0x14d7   :  { %v2216_v46 = vmul.f32 0.03125, %v2214_v45  ;;  %v2211_v48 = vpop.xlane.xlu0 %2210 }
0x14d8   :  { %v2215_v51 = vmul.f32 0.03125, %v2211_v48 }
0x14d9   :  { %v2218_v52 = vadd.f32 1e-05, %v2216_v46 }
0x14da   :  { %v2217_v55 = vadd.f32 1e-05, %v2215_v51 }
0x14db   :  { %3183 = vrsqrt.f32 %v2218_v52 }
0x14dc   :  { %3185 = vrsqrt.f32 %v2217_v55 }
0x14e5   :  { %v3184_v13 = vpop.eup %3183 }
0x14e6   :  { %v3186_v14 = vpop.eup %3185  ;;  %v2222_v15 = vmul.f32 %v3184_v13, %v2206_v63 }
0x14e7   :  { %v2221_v17 = vmul.f32 %v3186_v14, %v2205_v1 }
0x14e8   :  { %v2230_v22 = vmul.f32 %v2461_v3, %v2222_v15 }
0x14e9   :  { %v2229_v29 = vmul.f32 %v2461_v3, %v2221_v17 }
0x14ea   :  { %v2238_v23 = vadd.f32 %v2462_v21, %v2230_v22 }
0x14eb   :  { %v2237_v32 = vadd.f32 %v2462_v21, %v2229_v29 }
0x14ed   :  { %2893 = vmatprep.mubr.msk.f32.mxu0 %vm201_vm1, %v2237_v32 }
0x14ee   :  { %2894 = vmatmul.mubr.msk.f32.vlgmr.msra.gmra.mrb[18].mxu0 %vm201_vm1, %v2238_v23 }
0x15c1   :  { %v2895_v25 = vpop.f32.mrb[18].mxu0 }
0x15c2   :  { %v2328_v28 = vadd.f32 %v2895_v25, %v2463_v24  ;;  %v2322_v26 = vpop.f32.mrb[19].mxu0 }
0x15c3   :  { %v2323_v31 = vadd.f32 %v2463_v24, %v2322_v26 }
0x15c4   :  { %2332 = vst.msk [vmem:[#allocation2 + $0x8] sm:$0xff] %vm201_vm1, %v2328_v28 }
0x15c5   :  { %2331 = vst.msk [vmem:[#allocation2] sm:$0xff] %vm201_vm1, %v2323_v31 }
0x15c6   :  { %3198 = shalt.err (!%p3195_p4)
}
0x15c7   :  { %s3970_s4 = sld [smem:[#allocation16_spill]] }
0x15cd   :  { %s3199_s27 = scalar_lea.hbm %s3970_s4, 256 }
0x15ce   :  { %p3200_p5 = scmp.ne.s32.totalorder %s3970_s4, %s3199_s27  ;;  %p3203_p6 = scmp.lt.u32.totalorder %s3199_s27, %s3970_s4 }
0x15d0   :  { %p3205_p7 = pnand %p3203_p6, %p3200_p5 }
0x15d2   :  { %3208 = shalt.err (!%p3205_p7)
}
0x15d3   :  { %s3212_s19 = smov 128   ;;  %s3213_s20 = smov 8  }
0x15d4   :  { %2344 = dma.vmem_to_hbm [thread:$0]  %s2339_s13, 256, %s3970_s4, [#allocation3], %s3212_s19, %s3212_s19, %s3213_s20  }
0x15d5   :  { %3209 = dma.done.wait [#allocation3], 256  }
0x15d6   :  { %3210 = vsyncadd [#allocation3], 4294967040 }
0x15d7   :  { %2348 = vsyncpa [#allocation3], 1 }

</bundles_post_ra>
